<compile_context>
chip_gen: v7x
topology: tpu7x:2x2x1
jax: 0.10.0
libtpu: 0.0.40
codegen_flags: <defaults>
</compile_context>

<pallas_src>
import jax
import jax.numpy as jnp
import numpy as np
from jax import lax
from jax.experimental import pallas as pl
from jax.experimental.pallas import tpu as pltpu


_VMEM_SPEC = pl.BlockSpec(memory_space=pltpu.MemorySpace.VMEM)


# ------------------------------ Pallas kernel ------------------------------ #

def _siamnet_kernel(x_ref, mask_ref, wih_ref, brow_ref, whh_ref,
                    wcls_ref, bcls_ref, out_ref):
    """Fused BiLSTM (fwd+bwd, both sequences) + masked sum-pool + manhattan head.

    x_ref    : (L*4B, 2D) bf16  rows per step = [tgt_fwd | doc_fwd | tgt_bwd | doc_bwd]
               fwd rows carry x in cols 0:D (cols D:2D zero), bwd rows the reverse;
               bwd rows are time-reversed and zero-padded to L.
    mask_ref : (L, 4B, H) f32   1.0 for valid timesteps, 0.0 for padding (pre-broadcast).
    wih_ref  : (2D, 4H)  bf16   vstack(Wih_fwd, Wih_bwd), gate order [i, f, o, g].
    brow_ref : (4B, 4H)  f32    per-row bias (b_fwd for fwd rows, b_bwd for bwd rows).
    whh_ref  : (2H, 4H)  bf16   vstack(Whh_fwd, Whh_bwd).
    wcls_ref : (1, NL) f32, bcls_ref : (1, NL) f32
    out_ref  : (B, NL) f32
    """
    L, B4, H = mask_ref.shape
    B2 = B4 // 2
    B = B4 // 4
    H2 = 2 * H
    H4 = 4 * H

    # ---- hoisted, direction-stacked input projection (bf16 MXU, f32 accumulate).
    gx = jnp.dot(x_ref[...], wih_ref[...], preferred_element_type=jnp.float32)
    gx = gx.reshape(L, B4, H4) + brow_ref[...][None]          # (L, 4B, 4H), value

    whh = whh_ref[...]                                        # (2H, 4H) bf16, loop-invariant

    # Direction-placement mask for the packed hidden state (built once, hoisted).
    row_f = lax.broadcasted_iota(jnp.int32, (B4, H2), 0) < B2
    col_f = lax.broadcasted_iota(jnp.int32, (B4, H2), 1) < H
    dirmask = (row_f == col_f).astype(jnp.float32)            # (4B, 2H)

    h_pk = jnp.zeros((B4, H2), jnp.bfloat16)                  # direction-placed hidden
    c = jnp.zeros((B4, H), jnp.float32)
    acc = jnp.zeros((B4, H), jnp.float32)

    # Fully-unrolled recurrence (L is small & static; literal indices everywhere).
    for t in range(L):
        gh = jnp.dot(h_pk, whh, preferred_element_type=jnp.float32)   # (4B, 4H)
        gates = gx[t] + gh
        # gate layout [i, f, o, g]: one sigmoid region + one tanh region per step.
        sig = jax.nn.sigmoid(gates[:, :3 * H])
        g_g = jnp.tanh(gates[:, 3 * H:])
        i_g = sig[:, :H]
        f_g = sig[:, H:2 * H]
        o_g = sig[:, 2 * H:]
        c = f_g * c + i_g * g_g
        h = o_g * jnp.tanh(c)
        # attention softmax over a size-1 axis == 1.0 -> pooling is a masked sum.
        acc = acc + h * mask_ref[t]
        # re-place h for the next step's direction-stacked matmul.
        h_pk = (jnp.concatenate([h, h], axis=1) * dirmask).astype(jnp.bfloat16)

    # ---- manhattan similarity straight from acc row-slices (no lane concats).
    # acc rows: [tgt_fwd (0:B) | doc_fwd (B:2B) | tgt_bwd (2B:3B) | doc_bwd (3B:4B)]
    d_f = jnp.abs(acc[0:B] - acc[B:B2])
    d_b = jnp.abs(acc[B2:B2 + B] - acc[B2 + B:])
    sim = -(jnp.sum(d_f, axis=1, keepdims=True)
            + jnp.sum(d_b, axis=1, keepdims=True))             # (B, 1)

    # softmax over the batch axis -> Linear(1, NL)
    e = jnp.exp(sim - jnp.max(sim, axis=0, keepdims=True))
    sm = e / jnp.sum(e, axis=0, keepdims=True)
    out_ref[...] = sm * wcls_ref[...] + bcls_ref[...]


# ------------------------------ JAX wrapper -------------------------------- #

def _reorder_gates(w):
    """Reorder packed gate blocks [i, f, g, o] -> [i, f, o, g] along last axis."""
    i, f, g, o = jnp.split(w, 4, axis=-1)
    return jnp.concatenate([i, f, o, g], axis=-1)


def siamnet_forward(input_ids, target_ids, params):
    emb = params["embedding"]
    doc = jnp.take(emb, input_ids, axis=0).astype(jnp.float32)    # (B, L_doc, D)
    tgt = jnp.take(emb, target_ids, axis=0).astype(jnp.float32)   # (B, L_tgt, D)
    B, L_doc, D = doc.shape
    L_tgt = tgt.shape[1]
    L = max(L_doc, L_tgt)
    H = params["whh_f"].shape[0]
    NL = params["wcls"].shape[1]

    # Dropping the attention pass is only valid because the context vector has
    # output dim 1 (softmax over a size-1 axis == 1.0).
    assert params["ctx_row"].shape[0] == 1

    def pad_t(x):
        return jnp.pad(x, ((0, 0), (0, L - x.shape[1]), (0, 0)))

    # rows = [tgt_fwd | doc_fwd | tgt_bwd | doc_bwd]; bwd rows time-reversed.
    fwd = jnp.concatenate([pad_t(tgt), pad_t(doc)], axis=0)                    # (2B, L, D)
    bwd = jnp.concatenate([pad_t(jnp.flip(tgt, axis=1)),
                           pad_t(jnp.flip(doc, axis=1))], axis=0)              # (2B, L, D)
    zeros = jnp.zeros_like(fwd)
    # direction-stacked input: fwd rows use cols 0:D, bwd rows use cols D:2D.
    x = jnp.concatenate([jnp.concatenate([fwd, zeros], axis=-1),
                         jnp.concatenate([zeros, bwd], axis=-1)], axis=0)      # (4B, L, 2D)
    x = jnp.transpose(x, (1, 0, 2)).reshape(L * 4 * B, 2 * D).astype(jnp.bfloat16)

    lens = np.array([L_tgt] * B + [L_doc] * B + [L_tgt] * B + [L_doc] * B,
                    dtype=np.int32)
    mask_np = (np.arange(L)[:, None] < lens[None, :]).astype(np.float32)       # (L, 4B)
    mask = jnp.asarray(np.ascontiguousarray(
        np.broadcast_to(mask_np[:, :, None], (L, 4 * B, H))))                  # (L, 4B, H)

    # direction-stacked weights, gate order [i, f, o, g], bf16 MXU operands.
    wih = jnp.concatenate([_reorder_gates(params["wih_f"]),
                           _reorder_gates(params["wih_b"])], axis=0).astype(jnp.bfloat16)  # (2D, 4H)
    whh = jnp.concatenate([_reorder_gates(params["whh_f"]),
                           _reorder_gates(params["whh_b"])], axis=0).astype(jnp.bfloat16)  # (2H, 4H)
    brow = jnp.concatenate(
        [jnp.broadcast_to(_reorder_gates(params["b_f"]), (2 * B, 4 * H)),
         jnp.broadcast_to(_reorder_gates(params["b_b"]), (2 * B, 4 * H))], axis=0)         # (4B, 4H)

    # NOTE: wattn/battn/ctx_row are intentionally not passed: the reference's
    # attention weights are softmax over a size-1 axis == 1.0, so they cancel.
    return pl.pallas_call(
        _siamnet_kernel,
        out_shape=jax.ShapeDtypeStruct((B, NL), jnp.float32),
        in_specs=[_VMEM_SPEC] * 7,
        out_specs=_VMEM_SPEC,
        compiler_params=pltpu.CompilerParams(vmem_limit_bytes=32 * 1024 * 1024),
    )(x, mask, wih, brow, whh, params["wcls"], params["bcls"])


# --------------------------- pure-JAX reference ---------------------------- #

def reference_forward(input_ids, target_ids, params):
    emb = params["embedding"]

    def lstm_dir(x, wih, whh, b):                   # x: (B, L, D)
        B, _, _ = x.shape
        H = whh.shape[0]

        def step(carry, x_t):
            h, c = carry
            gates = x_t @ wih + h @ whh + b[0]
            i, f, g, o = jnp.split(gates, 4, axis=-1)
            i = jax.nn.sigmoid(i); f = jax.nn.sigmoid(f)
            g = jnp.tanh(g); o = jax.nn.sigmoid(o)
            c = f * c + i * g
            h = o * jnp.tanh(c)
            return (h, c), h

        init = (jnp.zeros((B, H), jnp.float32), jnp.zeros((B, H), jnp.float32))
        _, hs = lax.scan(step, init, jnp.transpose(x, (1, 0, 2)))
        return jnp.transpose(hs, (1, 0, 2))         # (B, L, H)

    def bilstm(x):
        hf = lstm_dir(x, params["wih_f"], params["whh_f"], params["b_f"])
        hb = lstm_dir(jnp.flip(x, axis=1),
                      params["wih_b"], params["whh_b"], params["b_b"])
        hb = jnp.flip(hb, axis=1)
        return jnp.concatenate([hf, hb], axis=-1)   # (B, L, 2H)

    def pool(out):
        coeff = jnp.tanh(out @ params["wattn"] + params["battn"][0])
        coeff = coeff @ params["ctx_row"].T          # (B, L, 1)
        attn = jax.nn.softmax(coeff, axis=-1)        # size-1 axis -> all ones
        return jnp.sum(out * attn, axis=1)           # (B, 2H)

    doc = jnp.take(emb, input_ids, axis=0)
    tgt = jnp.take(emb, target_ids, axis=0)
    tp = pool(bilstm(tgt))
    dp = pool(bilstm(doc))
    sim = -jnp.sum(jnp.abs(tp - dp), axis=1, keepdims=True)
    sim = jax.nn.softmax(sim, axis=0)
    return sim @ params["wcls"] + params["bcls"]


# --------------------------------- main ------------------------------------ #

def init_params(key, vocab, glove_hidden, hidden, num_labels):
    D, H, NL = glove_hidden, hidden, num_labels
    ks = jax.random.split(key, 12)
    s = 0.1
    return {
        "embedding": jax.random.normal(ks[0], (vocab, D), jnp.float32),
        # LSTM weights, stored pre-transposed: x @ wih + h @ whh + b, gates [i,f,g,o]
        "wih_f": s * jax.random.normal(ks[1], (D, 4 * H), jnp.float32),
        "whh_f": s * jax.random.normal(ks[2], (H, 4 * H), jnp.float32),
        "b_f": s * jax.random.normal(ks[3], (1, 4 * H), jnp.float32),
        "wih_b": s * jax.random.normal(ks[4], (D, 4 * H), jnp.float32),
        "whh_b": s * jax.random.normal(ks[5], (H, 4 * H), jnp.float32),
        "b_b": s * jax.random.normal(ks[6], (1, 4 * H), jnp.float32),
        # W: Linear(2H, 2H) (weight.T), bias  -- no effect on output (attn == 1)
        "wattn": s * jax.random.normal(ks[7], (2 * H, 2 * H), jnp.float32),
        "battn": s * jax.random.normal(ks[8], (1, 2 * H), jnp.float32),
        # context_vector (2H, 1) stored as its transpose (1, 2H)
        "ctx_row": s * jax.random.normal(ks[9], (1, 2 * H), jnp.float32),
        # classifier: Linear(1, num_labels) (weight.T), bias
        "wcls": s * jax.random.normal(ks[10], (1, NL), jnp.float32),
        "bcls": s * jax.random.normal(ks[11], (1, NL), jnp.float32),
    }


if __name__ == "__main__":
    VOCAB, GLOVE_D, HIDDEN, NUM_LABELS = 50, 32, 32, 3
    B, L_TGT, L_DOC = 2, 8, 12

    root = jax.random.PRNGKey(0)
    k_params, k_doc, k_tgt = jax.random.split(root, 3)
    params = init_params(k_params, VOCAB, GLOVE_D, HIDDEN, NUM_LABELS)

    input_ids = jax.random.randint(k_doc, (B, L_DOC), 0, VOCAB, dtype=jnp.int32)
    target_ids = jax.random.randint(k_tgt, (B, L_TGT), 0, VOCAB, dtype=jnp.int32)

    out = siamnet_forward(input_ids, target_ids, params)
    out = jax.block_until_ready(out)

    with jax.default_matmul_precision("highest"):
        ref = jax.block_until_ready(reference_forward(input_ids, target_ids, params))

    # bf16 MXU operands (per perf review) introduce ~1e-2-level error through the
    # L-step recurrence + batch softmax, hence the relaxed tolerance vs the f32 ref.
    np.testing.assert_allclose(np.asarray(out), np.asarray(ref), atol=2e-2, rtol=2e-2)
    print("KERNEL_OK")
</pallas_src>

<mosaic_0001>
module attributes {stable_mosaic.version = 11 : i64} {
  func.func @_siamnet_kernel(%arg0: memref<96x64xbf16, #tpu.memory_space<vmem>>, %arg1: memref<12x8x32xf32, #tpu.memory_space<vmem>>, %arg2: memref<64x128xbf16, #tpu.memory_space<vmem>>, %arg3: memref<8x128xf32, #tpu.memory_space<vmem>>, %arg4: memref<64x128xbf16, #tpu.memory_space<vmem>>, %arg5: memref<1x3xf32, #tpu.memory_space<vmem>>, %arg6: memref<1x3xf32, #tpu.memory_space<vmem>>, %arg7: memref<2x3xf32, #tpu.memory_space<vmem>>) attributes {dimension_semantics = [], scalar_prefetch = 0 : i64, scratch_operands = 0 : i64, tpu.core_type = #tpu.core_type<tc>} {
    %c0 = arith.constant 0 : index
    %c0_0 = arith.constant 0 : index
    %0 = vector.load %arg0[%c0, %c0_0] : memref<96x64xbf16, #tpu.memory_space<vmem>>, vector<96x64xbf16>
    %c0_1 = arith.constant 0 : index
    %c0_2 = arith.constant 0 : index
    %1 = vector.load %arg2[%c0_1, %c0_2] : memref<64x128xbf16, #tpu.memory_space<vmem>>, vector<64x128xbf16>
    %cst = arith.constant dense<0.000000e+00> : vector<96x128xf32>
    %2 = tpu.matmul %0, %1, %cst {dimension_numbers = #tpu.dot_dimension_numbers<[1], [0], [0], [1], [0, 0, 1, 1], [], []>} : vector<96x64xbf16>, vector<64x128xbf16>, vector<96x128xf32> -> vector<96x128xf32>
    %3 = vector.shape_cast %2 : vector<96x128xf32> to vector<12x8x128xf32>
    %c0_3 = arith.constant 0 : index
    %c0_4 = arith.constant 0 : index
    %4 = vector.load %arg3[%c0_3, %c0_4] : memref<8x128xf32, #tpu.memory_space<vmem>>, vector<8x128xf32>
    %5 = vector.shape_cast %4 : vector<8x128xf32> to vector<1x8x128xf32>
    %6 = vector.broadcast %5 : vector<1x8x128xf32> to vector<12x8x128xf32>
    %7 = arith.addf %3, %6 : vector<12x8x128xf32>
    %c0_5 = arith.constant 0 : index
    %c0_6 = arith.constant 0 : index
    %8 = vector.load %arg4[%c0_5, %c0_6] : memref<64x128xbf16, #tpu.memory_space<vmem>>, vector<64x128xbf16>
    %9 = tpu.iota {dimensions = array<i32: 0>} : vector<8x64xi32>
    %c4_i32 = arith.constant 4 : i32
    %10 = vector.broadcast %c4_i32 : i32 to vector<8x64xi32>
    %11 = arith.cmpi slt, %9, %10 : vector<8x64xi32>
    %12 = tpu.iota {dimensions = array<i32: 1>} : vector<8x64xi32>
    %c32_i32 = arith.constant 32 : i32
    %13 = vector.broadcast %c32_i32 : i32 to vector<8x64xi32>
    %14 = arith.cmpi slt, %12, %13 : vector<8x64xi32>
    %15 = arith.xori %11, %14 : vector<8x64xi1>
    %cst_7 = arith.constant dense<true> : vector<8x64xi1>
    %16 = arith.xori %15, %cst_7 : vector<8x64xi1>
    %17 = arith.extui %16 : vector<8x64xi1> to vector<8x64xi32>
    %18 = arith.sitofp %17 : vector<8x64xi32> to vector<8x64xf32>
    %cst_8 = arith.constant 0.000000e+00 : bf16
    %19 = vector.broadcast %cst_8 : bf16 to vector<8x64xbf16>
    %cst_9 = arith.constant 0.000000e+00 : f32
    %20 = vector.broadcast %cst_9 : f32 to vector<8x32xf32>
    %cst_10 = arith.constant 0.000000e+00 : f32
    %21 = vector.broadcast %cst_10 : f32 to vector<8x32xf32>
    %cst_11 = arith.constant dense<0.000000e+00> : vector<8x128xf32>
    %22 = tpu.matmul %19, %8, %cst_11 {dimension_numbers = #tpu.dot_dimension_numbers<[1], [0], [0], [1], [0, 0, 1, 1], [], []>} : vector<8x64xbf16>, vector<64x128xbf16>, vector<8x128xf32> -> vector<8x128xf32>
    %23 = vector.extract_strided_slice %7 {offsets = [0, 0, 0], sizes = [1, 8, 128], strides = [1, 1, 1]} : vector<12x8x128xf32> to vector<1x8x128xf32>
    %24 = vector.shape_cast %23 : vector<1x8x128xf32> to vector<8x128xf32>
    %25 = arith.addf %24, %22 : vector<8x128xf32>
    %26 = vector.extract_strided_slice %25 {offsets = [0, 0], sizes = [8, 96], strides = [1, 1]} : vector<8x128xf32> to vector<8x96xf32>
    %27 = arith.negf %26 : vector<8x96xf32>
    %28 = math.exp %27 : vector<8x96xf32>
    %cst_12 = arith.constant 1.000000e+00 : f32
    %29 = vector.broadcast %cst_12 : f32 to vector<8x96xf32>
    %30 = arith.addf %29, %28 : vector<8x96xf32>
    %31 = arith.divf %29, %30 : vector<8x96xf32>
    %32 = vector.extract_strided_slice %25 {offsets = [0, 96], sizes = [8, 32], strides = [1, 1]} : vector<8x128xf32> to vector<8x32xf32>
    %33 = math.tanh %32 : vector<8x32xf32>
    %34 = vector.extract_strided_slice %31 {offsets = [0, 0], sizes = [8, 32], strides = [1, 1]} : vector<8x96xf32> to vector<8x32xf32>
    %35 = vector.extract_strided_slice %31 {offsets = [0, 32], sizes = [8, 32], strides = [1, 1]} : vector<8x96xf32> to vector<8x32xf32>
    %36 = vector.extract_strided_slice %31 {offsets = [0, 64], sizes = [8, 32], strides = [1, 1]} : vector<8x96xf32> to vector<8x32xf32>
    %37 = arith.mulf %35, %20 : vector<8x32xf32>
    %38 = arith.mulf %34, %33 : vector<8x32xf32>
    %39 = arith.addf %37, %38 : vector<8x32xf32>
    %40 = math.tanh %39 : vector<8x32xf32>
    %41 = arith.mulf %36, %40 : vector<8x32xf32>
    %c0_13 = arith.constant 0 : index
    %c0_14 = arith.constant 0 : index
    %c0_15 = arith.constant 0 : index
    %42 = vector.load %arg1[%c0_13, %c0_14, %c0_15] : memref<12x8x32xf32, #tpu.memory_space<vmem>>, vector<1x8x32xf32>
    %43 = vector.shape_cast %42 : vector<1x8x32xf32> to vector<8x32xf32>
    %44 = arith.mulf %41, %43 : vector<8x32xf32>
    %45 = arith.addf %21, %44 : vector<8x32xf32>
    %46 = tpu.concatenate %41, %41 in 1 : vector<8x32xf32>, vector<8x32xf32> -> vector<8x64xf32>
    %47 = arith.mulf %46, %18 : vector<8x64xf32>
    %48 = arith.truncf %47 : vector<8x64xf32> to vector<8x64xbf16>
    %cst_16 = arith.constant dense<0.000000e+00> : vector<8x128xf32>
    %49 = tpu.matmul %48, %8, %cst_16 {dimension_numbers = #tpu.dot_dimension_numbers<[1], [0], [0], [1], [0, 0, 1, 1], [], []>} : vector<8x64xbf16>, vector<64x128xbf16>, vector<8x128xf32> -> vector<8x128xf32>
    %50 = vector.extract_strided_slice %7 {offsets = [1, 0, 0], sizes = [1, 8, 128], strides = [1, 1, 1]} : vector<12x8x128xf32> to vector<1x8x128xf32>
    %51 = vector.shape_cast %50 : vector<1x8x128xf32> to vector<8x128xf32>
    %52 = arith.addf %51, %49 : vector<8x128xf32>
    %53 = vector.extract_strided_slice %52 {offsets = [0, 0], sizes = [8, 96], strides = [1, 1]} : vector<8x128xf32> to vector<8x96xf32>
    %54 = arith.negf %53 : vector<8x96xf32>
    %55 = math.exp %54 : vector<8x96xf32>
    %cst_17 = arith.constant 1.000000e+00 : f32
    %56 = vector.broadcast %cst_17 : f32 to vector<8x96xf32>
    %57 = arith.addf %56, %55 : vector<8x96xf32>
    %58 = arith.divf %56, %57 : vector<8x96xf32>
    %59 = vector.extract_strided_slice %52 {offsets = [0, 96], sizes = [8, 32], strides = [1, 1]} : vector<8x128xf32> to vector<8x32xf32>
    %60 = math.tanh %59 : vector<8x32xf32>
    %61 = vector.extract_strided_slice %58 {offsets = [0, 0], sizes = [8, 32], strides = [1, 1]} : vector<8x96xf32> to vector<8x32xf32>
    %62 = vector.extract_strided_slice %58 {offsets = [0, 32], sizes = [8, 32], strides = [1, 1]} : vector<8x96xf32> to vector<8x32xf32>
    %63 = vector.extract_strided_slice %58 {offsets = [0, 64], sizes = [8, 32], strides = [1, 1]} : vector<8x96xf32> to vector<8x32xf32>
    %64 = arith.mulf %62, %39 : vector<8x32xf32>
    %65 = arith.mulf %61, %60 : vector<8x32xf32>
    %66 = arith.addf %64, %65 : vector<8x32xf32>
    %67 = math.tanh %66 : vector<8x32xf32>
    %68 = arith.mulf %63, %67 : vector<8x32xf32>
    %c1 = arith.constant 1 : index
    %c0_18 = arith.constant 0 : index
    %c0_19 = arith.constant 0 : index
    %69 = vector.load %arg1[%c1, %c0_18, %c0_19] : memref<12x8x32xf32, #tpu.memory_space<vmem>>, vector<1x8x32xf32>
    %70 = vector.shape_cast %69 : vector<1x8x32xf32> to vector<8x32xf32>
    %71 = arith.mulf %68, %70 : vector<8x32xf32>
    %72 = arith.addf %45, %71 : vector<8x32xf32>
    %73 = tpu.concatenate %68, %68 in 1 : vector<8x32xf32>, vector<8x32xf32> -> vector<8x64xf32>
    %74 = arith.mulf %73, %18 : vector<8x64xf32>
    %75 = arith.truncf %74 : vector<8x64xf32> to vector<8x64xbf16>
    %cst_20 = arith.constant dense<0.000000e+00> : vector<8x128xf32>
    %76 = tpu.matmul %75, %8, %cst_20 {dimension_numbers = #tpu.dot_dimension_numbers<[1], [0], [0], [1], [0, 0, 1, 1], [], []>} : vector<8x64xbf16>, vector<64x128xbf16>, vector<8x128xf32> -> vector<8x128xf32>
    %77 = vector.extract_strided_slice %7 {offsets = [2, 0, 0], sizes = [1, 8, 128], strides = [1, 1, 1]} : vector<12x8x128xf32> to vector<1x8x128xf32>
    %78 = vector.shape_cast %77 : vector<1x8x128xf32> to vector<8x128xf32>
    %79 = arith.addf %78, %76 : vector<8x128xf32>
    %80 = vector.extract_strided_slice %79 {offsets = [0, 0], sizes = [8, 96], strides = [1, 1]} : vector<8x128xf32> to vector<8x96xf32>
    %81 = arith.negf %80 : vector<8x96xf32>
    %82 = math.exp %81 : vector<8x96xf32>
    %cst_21 = arith.constant 1.000000e+00 : f32
    %83 = vector.broadcast %cst_21 : f32 to vector<8x96xf32>
    %84 = arith.addf %83, %82 : vector<8x96xf32>
    %85 = arith.divf %83, %84 : vector<8x96xf32>
    %86 = vector.extract_strided_slice %79 {offsets = [0, 96], sizes = [8, 32], strides = [1, 1]} : vector<8x128xf32> to vector<8x32xf32>
    %87 = math.tanh %86 : vector<8x32xf32>
    %88 = vector.extract_strided_slice %85 {offsets = [0, 0], sizes = [8, 32], strides = [1, 1]} : vector<8x96xf32> to vector<8x32xf32>
    %89 = vector.extract_strided_slice %85 {offsets = [0, 32], sizes = [8, 32], strides = [1, 1]} : vector<8x96xf32> to vector<8x32xf32>
    %90 = vector.extract_strided_slice %85 {offsets = [0, 64], sizes = [8, 32], strides = [1, 1]} : vector<8x96xf32> to vector<8x32xf32>
    %91 = arith.mulf %89, %66 : vector<8x32xf32>
    %92 = arith.mulf %88, %87 : vector<8x32xf32>
    %93 = arith.addf %91, %92 : vector<8x32xf32>
    %94 = math.tanh %93 : vector<8x32xf32>
    %95 = arith.mulf %90, %94 : vector<8x32xf32>
    %c2 = arith.constant 2 : index
    %c0_22 = arith.constant 0 : index
    %c0_23 = arith.constant 0 : index
    %96 = vector.load %arg1[%c2, %c0_22, %c0_23] : memref<12x8x32xf32, #tpu.memory_space<vmem>>, vector<1x8x32xf32>
    %97 = vector.shape_cast %96 : vector<1x8x32xf32> to vector<8x32xf32>
    %98 = arith.mulf %95, %97 : vector<8x32xf32>
    %99 = arith.addf %72, %98 : vector<8x32xf32>
    %100 = tpu.concatenate %95, %95 in 1 : vector<8x32xf32>, vector<8x32xf32> -> vector<8x64xf32>
    %101 = arith.mulf %100, %18 : vector<8x64xf32>
    %102 = arith.truncf %101 : vector<8x64xf32> to vector<8x64xbf16>
    %cst_24 = arith.constant dense<0.000000e+00> : vector<8x128xf32>
    %103 = tpu.matmul %102, %8, %cst_24 {dimension_numbers = #tpu.dot_dimension_numbers<[1], [0], [0], [1], [0, 0, 1, 1], [], []>} : vector<8x64xbf16>, vector<64x128xbf16>, vector<8x128xf32> -> vector<8x128xf32>
    %104 = vector.extract_strided_slice %7 {offsets = [3, 0, 0], sizes = [1, 8, 128], strides = [1, 1, 1]} : vector<12x8x128xf32> to vector<1x8x128xf32>
    %105 = vector.shape_cast %104 : vector<1x8x128xf32> to vector<8x128xf32>
    %106 = arith.addf %105, %103 : vector<8x128xf32>
    %107 = vector.extract_strided_slice %106 {offsets = [0, 0], sizes = [8, 96], strides = [1, 1]} : vector<8x128xf32> to vector<8x96xf32>
    %108 = arith.negf %107 : vector<8x96xf32>
    %109 = math.exp %108 : vector<8x96xf32>
    %cst_25 = arith.constant 1.000000e+00 : f32
    %110 = vector.broadcast %cst_25 : f32 to vector<8x96xf32>
    %111 = arith.addf %110, %109 : vector<8x96xf32>
    %112 = arith.divf %110, %111 : vector<8x96xf32>
    %113 = vector.extract_strided_slice %106 {offsets = [0, 96], sizes = [8, 32], strides = [1, 1]} : vector<8x128xf32> to vector<8x32xf32>
    %114 = math.tanh %113 : vector<8x32xf32>
    %115 = vector.extract_strided_slice %112 {offsets = [0, 0], sizes = [8, 32], strides = [1, 1]} : vector<8x96xf32> to vector<8x32xf32>
    %116 = vector.extract_strided_slice %112 {offsets = [0, 32], sizes = [8, 32], strides = [1, 1]} : vector<8x96xf32> to vector<8x32xf32>
    %117 = vector.extract_strided_slice %112 {offsets = [0, 64], sizes = [8, 32], strides = [1, 1]} : vector<8x96xf32> to vector<8x32xf32>
    %118 = arith.mulf %116, %93 : vector<8x32xf32>
    %119 = arith.mulf %115, %114 : vector<8x32xf32>
    %120 = arith.addf %118, %119 : vector<8x32xf32>
    %121 = math.tanh %120 : vector<8x32xf32>
    %122 = arith.mulf %117, %121 : vector<8x32xf32>
    %c3 = arith.constant 3 : index
    %c0_26 = arith.constant 0 : index
    %c0_27 = arith.constant 0 : index
    %123 = vector.load %arg1[%c3, %c0_26, %c0_27] : memref<12x8x32xf32, #tpu.memory_space<vmem>>, vector<1x8x32xf32>
    %124 = vector.shape_cast %123 : vector<1x8x32xf32> to vector<8x32xf32>
    %125 = arith.mulf %122, %124 : vector<8x32xf32>
    %126 = arith.addf %99, %125 : vector<8x32xf32>
    %127 = tpu.concatenate %122, %122 in 1 : vector<8x32xf32>, vector<8x32xf32> -> vector<8x64xf32>
    %128 = arith.mulf %127, %18 : vector<8x64xf32>
    %129 = arith.truncf %128 : vector<8x64xf32> to vector<8x64xbf16>
    %cst_28 = arith.constant dense<0.000000e+00> : vector<8x128xf32>
    %130 = tpu.matmul %129, %8, %cst_28 {dimension_numbers = #tpu.dot_dimension_numbers<[1], [0], [0], [1], [0, 0, 1, 1], [], []>} : vector<8x64xbf16>, vector<64x128xbf16>, vector<8x128xf32> -> vector<8x128xf32>
    %131 = vector.extract_strided_slice %7 {offsets = [4, 0, 0], sizes = [1, 8, 128], strides = [1, 1, 1]} : vector<12x8x128xf32> to vector<1x8x128xf32>
    %132 = vector.shape_cast %131 : vector<1x8x128xf32> to vector<8x128xf32>
    %133 = arith.addf %132, %130 : vector<8x128xf32>
    %134 = vector.extract_strided_slice %133 {offsets = [0, 0], sizes = [8, 96], strides = [1, 1]} : vector<8x128xf32> to vector<8x96xf32>
    %135 = arith.negf %134 : vector<8x96xf32>
    %136 = math.exp %135 : vector<8x96xf32>
    %cst_29 = arith.constant 1.000000e+00 : f32
    %137 = vector.broadcast %cst_29 : f32 to vector<8x96xf32>
    %138 = arith.addf %137, %136 : vector<8x96xf32>
    %139 = arith.divf %137, %138 : vector<8x96xf32>
    %140 = vector.extract_strided_slice %133 {offsets = [0, 96], sizes = [8, 32], strides = [1, 1]} : vector<8x128xf32> to vector<8x32xf32>
    %141 = math.tanh %140 : vector<8x32xf32>
    %142 = vector.extract_strided_slice %139 {offsets = [0, 0], sizes = [8, 32], strides = [1, 1]} : vector<8x96xf32> to vector<8x32xf32>
    %143 = vector.extract_strided_slice %139 {offsets = [0, 32], sizes = [8, 32], strides = [1, 1]} : vector<8x96xf32> to vector<8x32xf32>
    %144 = vector.extract_strided_slice %139 {offsets = [0, 64], sizes = [8, 32], strides = [1, 1]} : vector<8x96xf32> to vector<8x32xf32>
    %145 = arith.mulf %143, %120 : vector<8x32xf32>
    %146 = arith.mulf %142, %141 : vector<8x32xf32>
    %147 = arith.addf %145, %146 : vector<8x32xf32>
    %148 = math.tanh %147 : vector<8x32xf32>
    %149 = arith.mulf %144, %148 : vector<8x32xf32>
    %c4 = arith.constant 4 : index
    %c0_30 = arith.constant 0 : index
    %c0_31 = arith.constant 0 : index
    %150 = vector.load %arg1[%c4, %c0_30, %c0_31] : memref<12x8x32xf32, #tpu.memory_space<vmem>>, vector<1x8x32xf32>
    %151 = vector.shape_cast %150 : vector<1x8x32xf32> to vector<8x32xf32>
    %152 = arith.mulf %149, %151 : vector<8x32xf32>
    %153 = arith.addf %126, %152 : vector<8x32xf32>
    %154 = tpu.concatenate %149, %149 in 1 : vector<8x32xf32>, vector<8x32xf32> -> vector<8x64xf32>
    %155 = arith.mulf %154, %18 : vector<8x64xf32>
    %156 = arith.truncf %155 : vector<8x64xf32> to vector<8x64xbf16>
    %cst_32 = arith.constant dense<0.000000e+00> : vector<8x128xf32>
    %157 = tpu.matmul %156, %8, %cst_32 {dimension_numbers = #tpu.dot_dimension_numbers<[1], [0], [0], [1], [0, 0, 1, 1], [], []>} : vector<8x64xbf16>, vector<64x128xbf16>, vector<8x128xf32> -> vector<8x128xf32>
    %158 = vector.extract_strided_slice %7 {offsets = [5, 0, 0], sizes = [1, 8, 128], strides = [1, 1, 1]} : vector<12x8x128xf32> to vector<1x8x128xf32>
    %159 = vector.shape_cast %158 : vector<1x8x128xf32> to vector<8x128xf32>
    %160 = arith.addf %159, %157 : vector<8x128xf32>
    %161 = vector.extract_strided_slice %160 {offsets = [0, 0], sizes = [8, 96], strides = [1, 1]} : vector<8x128xf32> to vector<8x96xf32>
    %162 = arith.negf %161 : vector<8x96xf32>
    %163 = math.exp %162 : vector<8x96xf32>
    %cst_33 = arith.constant 1.000000e+00 : f32
    %164 = vector.broadcast %cst_33 : f32 to vector<8x96xf32>
    %165 = arith.addf %164, %163 : vector<8x96xf32>
    %166 = arith.divf %164, %165 : vector<8x96xf32>
    %167 = vector.extract_strided_slice %160 {offsets = [0, 96], sizes = [8, 32], strides = [1, 1]} : vector<8x128xf32> to vector<8x32xf32>
    %168 = math.tanh %167 : vector<8x32xf32>
    %169 = vector.extract_strided_slice %166 {offsets = [0, 0], sizes = [8, 32], strides = [1, 1]} : vector<8x96xf32> to vector<8x32xf32>
    %170 = vector.extract_strided_slice %166 {offsets = [0, 32], sizes = [8, 32], strides = [1, 1]} : vector<8x96xf32> to vector<8x32xf32>
    %171 = vector.extract_strided_slice %166 {offsets = [0, 64], sizes = [8, 32], strides = [1, 1]} : vector<8x96xf32> to vector<8x32xf32>
    %172 = arith.mulf %170, %147 : vector<8x32xf32>
    %173 = arith.mulf %169, %168 : vector<8x32xf32>
    %174 = arith.addf %172, %173 : vector<8x32xf32>
    %175 = math.tanh %174 : vector<8x32xf32>
    %176 = arith.mulf %171, %175 : vector<8x32xf32>
    %c5 = arith.constant 5 : index
    %c0_34 = arith.constant 0 : index
    %c0_35 = arith.constant 0 : index
    %177 = vector.load %arg1[%c5, %c0_34, %c0_35] : memref<12x8x32xf32, #tpu.memory_space<vmem>>, vector<1x8x32xf32>
    %178 = vector.shape_cast %177 : vector<1x8x32xf32> to vector<8x32xf32>
    %179 = arith.mulf %176, %178 : vector<8x32xf32>
    %180 = arith.addf %153, %179 : vector<8x32xf32>
    %181 = tpu.concatenate %176, %176 in 1 : vector<8x32xf32>, vector<8x32xf32> -> vector<8x64xf32>
    %182 = arith.mulf %181, %18 : vector<8x64xf32>
    %183 = arith.truncf %182 : vector<8x64xf32> to vector<8x64xbf16>
    %cst_36 = arith.constant dense<0.000000e+00> : vector<8x128xf32>
    %184 = tpu.matmul %183, %8, %cst_36 {dimension_numbers = #tpu.dot_dimension_numbers<[1], [0], [0], [1], [0, 0, 1, 1], [], []>} : vector<8x64xbf16>, vector<64x128xbf16>, vector<8x128xf32> -> vector<8x128xf32>
    %185 = vector.extract_strided_slice %7 {offsets = [6, 0, 0], sizes = [1, 8, 128], strides = [1, 1, 1]} : vector<12x8x128xf32> to vector<1x8x128xf32>
    %186 = vector.shape_cast %185 : vector<1x8x128xf32> to vector<8x128xf32>
    %187 = arith.addf %186, %184 : vector<8x128xf32>
    %188 = vector.extract_strided_slice %187 {offsets = [0, 0], sizes = [8, 96], strides = [1, 1]} : vector<8x128xf32> to vector<8x96xf32>
    %189 = arith.negf %188 : vector<8x96xf32>
    %190 = math.exp %189 : vector<8x96xf32>
    %cst_37 = arith.constant 1.000000e+00 : f32
    %191 = vector.broadcast %cst_37 : f32 to vector<8x96xf32>
    %192 = arith.addf %191, %190 : vector<8x96xf32>
    %193 = arith.divf %191, %192 : vector<8x96xf32>
    %194 = vector.extract_strided_slice %187 {offsets = [0, 96], sizes = [8, 32], strides = [1, 1]} : vector<8x128xf32> to vector<8x32xf32>
    %195 = math.tanh %194 : vector<8x32xf32>
    %196 = vector.extract_strided_slice %193 {offsets = [0, 0], sizes = [8, 32], strides = [1, 1]} : vector<8x96xf32> to vector<8x32xf32>
    %197 = vector.extract_strided_slice %193 {offsets = [0, 32], sizes = [8, 32], strides = [1, 1]} : vector<8x96xf32> to vector<8x32xf32>
    %198 = vector.extract_strided_slice %193 {offsets = [0, 64], sizes = [8, 32], strides = [1, 1]} : vector<8x96xf32> to vector<8x32xf32>
    %199 = arith.mulf %197, %174 : vector<8x32xf32>
    %200 = arith.mulf %196, %195 : vector<8x32xf32>
    %201 = arith.addf %199, %200 : vector<8x32xf32>
    %202 = math.tanh %201 : vector<8x32xf32>
    %203 = arith.mulf %198, %202 : vector<8x32xf32>
    %c6 = arith.constant 6 : index
    %c0_38 = arith.constant 0 : index
    %c0_39 = arith.constant 0 : index
    %204 = vector.load %arg1[%c6, %c0_38, %c0_39] : memref<12x8x32xf32, #tpu.memory_space<vmem>>, vector<1x8x32xf32>
    %205 = vector.shape_cast %204 : vector<1x8x32xf32> to vector<8x32xf32>
    %206 = arith.mulf %203, %205 : vector<8x32xf32>
    %207 = arith.addf %180, %206 : vector<8x32xf32>
    %208 = tpu.concatenate %203, %203 in 1 : vector<8x32xf32>, vector<8x32xf32> -> vector<8x64xf32>
    %209 = arith.mulf %208, %18 : vector<8x64xf32>
    %210 = arith.truncf %209 : vector<8x64xf32> to vector<8x64xbf16>
    %cst_40 = arith.constant dense<0.000000e+00> : vector<8x128xf32>
    %211 = tpu.matmul %210, %8, %cst_40 {dimension_numbers = #tpu.dot_dimension_numbers<[1], [0], [0], [1], [0, 0, 1, 1], [], []>} : vector<8x64xbf16>, vector<64x128xbf16>, vector<8x128xf32> -> vector<8x128xf32>
    %212 = vector.extract_strided_slice %7 {offsets = [7, 0, 0], sizes = [1, 8, 128], strides = [1, 1, 1]} : vector<12x8x128xf32> to vector<1x8x128xf32>
    %213 = vector.shape_cast %212 : vector<1x8x128xf32> to vector<8x128xf32>
    %214 = arith.addf %213, %211 : vector<8x128xf32>
    %215 = vector.extract_strided_slice %214 {offsets = [0, 0], sizes = [8, 96], strides = [1, 1]} : vector<8x128xf32> to vector<8x96xf32>
    %216 = arith.negf %215 : vector<8x96xf32>
    %217 = math.exp %216 : vector<8x96xf32>
    %cst_41 = arith.constant 1.000000e+00 : f32
    %218 = vector.broadcast %cst_41 : f32 to vector<8x96xf32>
    %219 = arith.addf %218, %217 : vector<8x96xf32>
    %220 = arith.divf %218, %219 : vector<8x96xf32>
    %221 = vector.extract_strided_slice %214 {offsets = [0, 96], sizes = [8, 32], strides = [1, 1]} : vector<8x128xf32> to vector<8x32xf32>
    %222 = math.tanh %221 : vector<8x32xf32>
    %223 = vector.extract_strided_slice %220 {offsets = [0, 0], sizes = [8, 32], strides = [1, 1]} : vector<8x96xf32> to vector<8x32xf32>
    %224 = vector.extract_strided_slice %220 {offsets = [0, 32], sizes = [8, 32], strides = [1, 1]} : vector<8x96xf32> to vector<8x32xf32>
    %225 = vector.extract_strided_slice %220 {offsets = [0, 64], sizes = [8, 32], strides = [1, 1]} : vector<8x96xf32> to vector<8x32xf32>
    %226 = arith.mulf %224, %201 : vector<8x32xf32>
    %227 = arith.mulf %223, %222 : vector<8x32xf32>
    %228 = arith.addf %226, %227 : vector<8x32xf32>
    %229 = math.tanh %228 : vector<8x32xf32>
    %230 = arith.mulf %225, %229 : vector<8x32xf32>
    %c7 = arith.constant 7 : index
    %c0_42 = arith.constant 0 : index
    %c0_43 = arith.constant 0 : index
    %231 = vector.load %arg1[%c7, %c0_42, %c0_43] : memref<12x8x32xf32, #tpu.memory_space<vmem>>, vector<1x8x32xf32>
    %232 = vector.shape_cast %231 : vector<1x8x32xf32> to vector<8x32xf32>
    %233 = arith.mulf %230, %232 : vector<8x32xf32>
    %234 = arith.addf %207, %233 : vector<8x32xf32>
    %235 = tpu.concatenate %230, %230 in 1 : vector<8x32xf32>, vector<8x32xf32> -> vector<8x64xf32>
    %236 = arith.mulf %235, %18 : vector<8x64xf32>
    %237 = arith.truncf %236 : vector<8x64xf32> to vector<8x64xbf16>
    %cst_44 = arith.constant dense<0.000000e+00> : vector<8x128xf32>
    %238 = tpu.matmul %237, %8, %cst_44 {dimension_numbers = #tpu.dot_dimension_numbers<[1], [0], [0], [1], [0, 0, 1, 1], [], []>} : vector<8x64xbf16>, vector<64x128xbf16>, vector<8x128xf32> -> vector<8x128xf32>
    %239 = vector.extract_strided_slice %7 {offsets = [8, 0, 0], sizes = [1, 8, 128], strides = [1, 1, 1]} : vector<12x8x128xf32> to vector<1x8x128xf32>
    %240 = vector.shape_cast %239 : vector<1x8x128xf32> to vector<8x128xf32>
    %241 = arith.addf %240, %238 : vector<8x128xf32>
    %242 = vector.extract_strided_slice %241 {offsets = [0, 0], sizes = [8, 96], strides = [1, 1]} : vector<8x128xf32> to vector<8x96xf32>
    %243 = arith.negf %242 : vector<8x96xf32>
    %244 = math.exp %243 : vector<8x96xf32>
    %cst_45 = arith.constant 1.000000e+00 : f32
    %245 = vector.broadcast %cst_45 : f32 to vector<8x96xf32>
    %246 = arith.addf %245, %244 : vector<8x96xf32>
    %247 = arith.divf %245, %246 : vector<8x96xf32>
    %248 = vector.extract_strided_slice %241 {offsets = [0, 96], sizes = [8, 32], strides = [1, 1]} : vector<8x128xf32> to vector<8x32xf32>
    %249 = math.tanh %248 : vector<8x32xf32>
    %250 = vector.extract_strided_slice %247 {offsets = [0, 0], sizes = [8, 32], strides = [1, 1]} : vector<8x96xf32> to vector<8x32xf32>
    %251 = vector.extract_strided_slice %247 {offsets = [0, 32], sizes = [8, 32], strides = [1, 1]} : vector<8x96xf32> to vector<8x32xf32>
    %252 = vector.extract_strided_slice %247 {offsets = [0, 64], sizes = [8, 32], strides = [1, 1]} : vector<8x96xf32> to vector<8x32xf32>
    %253 = arith.mulf %251, %228 : vector<8x32xf32>
    %254 = arith.mulf %250, %249 : vector<8x32xf32>
    %255 = arith.addf %253, %254 : vector<8x32xf32>
    %256 = math.tanh %255 : vector<8x32xf32>
    %257 = arith.mulf %252, %256 : vector<8x32xf32>
    %c8 = arith.constant 8 : index
    %c0_46 = arith.constant 0 : index
    %c0_47 = arith.constant 0 : index
    %258 = vector.load %arg1[%c8, %c0_46, %c0_47] : memref<12x8x32xf32, #tpu.memory_space<vmem>>, vector<1x8x32xf32>
    %259 = vector.shape_cast %258 : vector<1x8x32xf32> to vector<8x32xf32>
    %260 = arith.mulf %257, %259 : vector<8x32xf32>
    %261 = arith.addf %234, %260 : vector<8x32xf32>
    %262 = tpu.concatenate %257, %257 in 1 : vector<8x32xf32>, vector<8x32xf32> -> vector<8x64xf32>
    %263 = arith.mulf %262, %18 : vector<8x64xf32>
    %264 = arith.truncf %263 : vector<8x64xf32> to vector<8x64xbf16>
    %cst_48 = arith.constant dense<0.000000e+00> : vector<8x128xf32>
    %265 = tpu.matmul %264, %8, %cst_48 {dimension_numbers = #tpu.dot_dimension_numbers<[1], [0], [0], [1], [0, 0, 1, 1], [], []>} : vector<8x64xbf16>, vector<64x128xbf16>, vector<8x128xf32> -> vector<8x128xf32>
    %266 = vector.extract_strided_slice %7 {offsets = [9, 0, 0], sizes = [1, 8, 128], strides = [1, 1, 1]} : vector<12x8x128xf32> to vector<1x8x128xf32>
    %267 = vector.shape_cast %266 : vector<1x8x128xf32> to vector<8x128xf32>
    %268 = arith.addf %267, %265 : vector<8x128xf32>
    %269 = vector.extract_strided_slice %268 {offsets = [0, 0], sizes = [8, 96], strides = [1, 1]} : vector<8x128xf32> to vector<8x96xf32>
    %270 = arith.negf %269 : vector<8x96xf32>
    %271 = math.exp %270 : vector<8x96xf32>
    %cst_49 = arith.constant 1.000000e+00 : f32
    %272 = vector.broadcast %cst_49 : f32 to vector<8x96xf32>
    %273 = arith.addf %272, %271 : vector<8x96xf32>
    %274 = arith.divf %272, %273 : vector<8x96xf32>
    %275 = vector.extract_strided_slice %268 {offsets = [0, 96], sizes = [8, 32], strides = [1, 1]} : vector<8x128xf32> to vector<8x32xf32>
    %276 = math.tanh %275 : vector<8x32xf32>
    %277 = vector.extract_strided_slice %274 {offsets = [0, 0], sizes = [8, 32], strides = [1, 1]} : vector<8x96xf32> to vector<8x32xf32>
    %278 = vector.extract_strided_slice %274 {offsets = [0, 32], sizes = [8, 32], strides = [1, 1]} : vector<8x96xf32> to vector<8x32xf32>
    %279 = vector.extract_strided_slice %274 {offsets = [0, 64], sizes = [8, 32], strides = [1, 1]} : vector<8x96xf32> to vector<8x32xf32>
    %280 = arith.mulf %278, %255 : vector<8x32xf32>
    %281 = arith.mulf %277, %276 : vector<8x32xf32>
    %282 = arith.addf %280, %281 : vector<8x32xf32>
    %283 = math.tanh %282 : vector<8x32xf32>
    %284 = arith.mulf %279, %283 : vector<8x32xf32>
    %c9 = arith.constant 9 : index
    %c0_50 = arith.constant 0 : index
    %c0_51 = arith.constant 0 : index
    %285 = vector.load %arg1[%c9, %c0_50, %c0_51] : memref<12x8x32xf32, #tpu.memory_space<vmem>>, vector<1x8x32xf32>
    %286 = vector.shape_cast %285 : vector<1x8x32xf32> to vector<8x32xf32>
    %287 = arith.mulf %284, %286 : vector<8x32xf32>
    %288 = arith.addf %261, %287 : vector<8x32xf32>
    %289 = tpu.concatenate %284, %284 in 1 : vector<8x32xf32>, vector<8x32xf32> -> vector<8x64xf32>
    %290 = arith.mulf %289, %18 : vector<8x64xf32>
    %291 = arith.truncf %290 : vector<8x64xf32> to vector<8x64xbf16>
    %cst_52 = arith.constant dense<0.000000e+00> : vector<8x128xf32>
    %292 = tpu.matmul %291, %8, %cst_52 {dimension_numbers = #tpu.dot_dimension_numbers<[1], [0], [0], [1], [0, 0, 1, 1], [], []>} : vector<8x64xbf16>, vector<64x128xbf16>, vector<8x128xf32> -> vector<8x128xf32>
    %293 = vector.extract_strided_slice %7 {offsets = [10, 0, 0], sizes = [1, 8, 128], strides = [1, 1, 1]} : vector<12x8x128xf32> to vector<1x8x128xf32>
    %294 = vector.shape_cast %293 : vector<1x8x128xf32> to vector<8x128xf32>
    %295 = arith.addf %294, %292 : vector<8x128xf32>
    %296 = vector.extract_strided_slice %295 {offsets = [0, 0], sizes = [8, 96], strides = [1, 1]} : vector<8x128xf32> to vector<8x96xf32>
    %297 = arith.negf %296 : vector<8x96xf32>
    %298 = math.exp %297 : vector<8x96xf32>
    %cst_53 = arith.constant 1.000000e+00 : f32
    %299 = vector.broadcast %cst_53 : f32 to vector<8x96xf32>
    %300 = arith.addf %299, %298 : vector<8x96xf32>
    %301 = arith.divf %299, %300 : vector<8x96xf32>
    %302 = vector.extract_strided_slice %295 {offsets = [0, 96], sizes = [8, 32], strides = [1, 1]} : vector<8x128xf32> to vector<8x32xf32>
    %303 = math.tanh %302 : vector<8x32xf32>
    %304 = vector.extract_strided_slice %301 {offsets = [0, 0], sizes = [8, 32], strides = [1, 1]} : vector<8x96xf32> to vector<8x32xf32>
    %305 = vector.extract_strided_slice %301 {offsets = [0, 32], sizes = [8, 32], strides = [1, 1]} : vector<8x96xf32> to vector<8x32xf32>
    %306 = vector.extract_strided_slice %301 {offsets = [0, 64], sizes = [8, 32], strides = [1, 1]} : vector<8x96xf32> to vector<8x32xf32>
    %307 = arith.mulf %305, %282 : vector<8x32xf32>
    %308 = arith.mulf %304, %303 : vector<8x32xf32>
    %309 = arith.addf %307, %308 : vector<8x32xf32>
    %310 = math.tanh %309 : vector<8x32xf32>
    %311 = arith.mulf %306, %310 : vector<8x32xf32>
    %c10 = arith.constant 10 : index
    %c0_54 = arith.constant 0 : index
    %c0_55 = arith.constant 0 : index
    %312 = vector.load %arg1[%c10, %c0_54, %c0_55] : memref<12x8x32xf32, #tpu.memory_space<vmem>>, vector<1x8x32xf32>
    %313 = vector.shape_cast %312 : vector<1x8x32xf32> to vector<8x32xf32>
    %314 = arith.mulf %311, %313 : vector<8x32xf32>
    %315 = arith.addf %288, %314 : vector<8x32xf32>
    %316 = tpu.concatenate %311, %311 in 1 : vector<8x32xf32>, vector<8x32xf32> -> vector<8x64xf32>
    %317 = arith.mulf %316, %18 : vector<8x64xf32>
    %318 = arith.truncf %317 : vector<8x64xf32> to vector<8x64xbf16>
    %cst_56 = arith.constant dense<0.000000e+00> : vector<8x128xf32>
    %319 = tpu.matmul %318, %8, %cst_56 {dimension_numbers = #tpu.dot_dimension_numbers<[1], [0], [0], [1], [0, 0, 1, 1], [], []>} : vector<8x64xbf16>, vector<64x128xbf16>, vector<8x128xf32> -> vector<8x128xf32>
    %320 = vector.extract_strided_slice %7 {offsets = [11, 0, 0], sizes = [1, 8, 128], strides = [1, 1, 1]} : vector<12x8x128xf32> to vector<1x8x128xf32>
    %321 = vector.shape_cast %320 : vector<1x8x128xf32> to vector<8x128xf32>
    %322 = arith.addf %321, %319 : vector<8x128xf32>
    %323 = vector.extract_strided_slice %322 {offsets = [0, 0], sizes = [8, 96], strides = [1, 1]} : vector<8x128xf32> to vector<8x96xf32>
    %324 = arith.negf %323 : vector<8x96xf32>
    %325 = math.exp %324 : vector<8x96xf32>
    %cst_57 = arith.constant 1.000000e+00 : f32
    %326 = vector.broadcast %cst_57 : f32 to vector<8x96xf32>
    %327 = arith.addf %326, %325 : vector<8x96xf32>
    %328 = arith.divf %326, %327 : vector<8x96xf32>
    %329 = vector.extract_strided_slice %322 {offsets = [0, 96], sizes = [8, 32], strides = [1, 1]} : vector<8x128xf32> to vector<8x32xf32>
    %330 = math.tanh %329 : vector<8x32xf32>
    %331 = vector.extract_strided_slice %328 {offsets = [0, 0], sizes = [8, 32], strides = [1, 1]} : vector<8x96xf32> to vector<8x32xf32>
    %332 = vector.extract_strided_slice %328 {offsets = [0, 32], sizes = [8, 32], strides = [1, 1]} : vector<8x96xf32> to vector<8x32xf32>
    %333 = vector.extract_strided_slice %328 {offsets = [0, 64], sizes = [8, 32], strides = [1, 1]} : vector<8x96xf32> to vector<8x32xf32>
    %334 = arith.mulf %332, %309 : vector<8x32xf32>
    %335 = arith.mulf %331, %330 : vector<8x32xf32>
    %336 = arith.addf %334, %335 : vector<8x32xf32>
    %337 = math.tanh %336 : vector<8x32xf32>
    %338 = arith.mulf %333, %337 : vector<8x32xf32>
    %c11 = arith.constant 11 : index
    %c0_58 = arith.constant 0 : index
    %c0_59 = arith.constant 0 : index
    %339 = vector.load %arg1[%c11, %c0_58, %c0_59] : memref<12x8x32xf32, #tpu.memory_space<vmem>>, vector<1x8x32xf32>
    %340 = vector.shape_cast %339 : vector<1x8x32xf32> to vector<8x32xf32>
    %341 = arith.mulf %338, %340 : vector<8x32xf32>
    %342 = arith.addf %315, %341 : vector<8x32xf32>
    %343 = vector.extract_strided_slice %342 {offsets = [0, 0], sizes = [2, 32], strides = [1, 1]} : vector<8x32xf32> to vector<2x32xf32>
    %344 = vector.extract_strided_slice %342 {offsets = [2, 0], sizes = [2, 32], strides = [1, 1]} : vector<8x32xf32> to vector<2x32xf32>
    %345 = arith.subf %343, %344 : vector<2x32xf32>
    %346 = math.absf %345 : vector<2x32xf32>
    %347 = vector.extract_strided_slice %342 {offsets = [4, 0], sizes = [2, 32], strides = [1, 1]} : vector<8x32xf32> to vector<2x32xf32>
    %348 = vector.extract_strided_slice %342 {offsets = [6, 0], sizes = [2, 32], strides = [1, 1]} : vector<8x32xf32> to vector<2x32xf32>
    %349 = arith.subf %347, %348 : vector<2x32xf32>
    %350 = math.absf %349 : vector<2x32xf32>
    %cst_60 = arith.constant dense<0.000000e+00> : vector<2xf32>
    %351 = vector.multi_reduction <add>, %346, %cst_60 [1] : vector<2x32xf32> to vector<2xf32>
    %352 = vector.shape_cast %351 : vector<2xf32> to vector<2x1xf32>
    %cst_61 = arith.constant dense<0.000000e+00> : vector<2xf32>
    %353 = vector.multi_reduction <add>, %350, %cst_61 [1] : vector<2x32xf32> to vector<2xf32>
    %354 = vector.shape_cast %353 : vector<2xf32> to vector<2x1xf32>
    %355 = arith.addf %352, %354 : vector<2x1xf32>
    %cst_62 = arith.constant 0.000000e+00 : f32
    %356 = vector.broadcast %cst_62 : f32 to vector<2x1xf32>
    %357 = arith.subf %356, %355 : vector<2x1xf32>
    %cst_63 = arith.constant dense<0xFF800000> : vector<1xf32>
    %358 = vector.multi_reduction <maximumf>, %357, %cst_63 [0] : vector<2x1xf32> to vector<1xf32>
    %359 = vector.shape_cast %358 : vector<1xf32> to vector<1x1xf32>
    %360 = vector.broadcast %359 : vector<1x1xf32> to vector<2x1xf32>
    %361 = arith.subf %357, %360 : vector<2x1xf32>
    %362 = math.exp %361 : vector<2x1xf32>
    %cst_64 = arith.constant dense<0.000000e+00> : vector<1xf32>
    %363 = vector.multi_reduction <add>, %362, %cst_64 [0] : vector<2x1xf32> to vector<1xf32>
    %364 = vector.shape_cast %363 : vector<1xf32> to vector<1x1xf32>
    %365 = vector.broadcast %364 : vector<1x1xf32> to vector<2x1xf32>
    %366 = arith.divf %362, %365 : vector<2x1xf32>
    %c0_65 = arith.constant 0 : index
    %c0_66 = arith.constant 0 : index
    %367 = vector.load %arg5[%c0_65, %c0_66] : memref<1x3xf32, #tpu.memory_space<vmem>>, vector<1x3xf32>
    %368 = vector.broadcast %366 : vector<2x1xf32> to vector<2x3xf32>
    %369 = vector.broadcast %367 : vector<1x3xf32> to vector<2x3xf32>
    %370 = arith.mulf %368, %369 : vector<2x3xf32>
    %c0_67 = arith.constant 0 : index
    %c0_68 = arith.constant 0 : index
    %371 = vector.load %arg6[%c0_67, %c0_68] : memref<1x3xf32, #tpu.memory_space<vmem>>, vector<1x3xf32>
    %372 = vector.broadcast %371 : vector<1x3xf32> to vector<2x3xf32>
    %373 = arith.addf %370, %372 : vector<2x3xf32>
    %c0_69 = arith.constant 0 : index
    %c0_70 = arith.constant 0 : index
    %374 = vector.load %arg7[%c0_69, %c0_70] : memref<2x3xf32, #tpu.memory_space<vmem>>, vector<2x3xf32>
    tpu.vector_store %arg7[%c0_69, %c0_70], %373 {strides = array<i32>} : memref<2x3xf32, #tpu.memory_space<vmem>>, vector<2x3xf32>,
    return
  }
}

</mosaic_0001>

<bundles_post_ra>
// kernel: tpu_custom_call.1
= control target key start
LH: loop header
LB: loop body
LE: loop exit
PB: predicated region body
PF: predicated region fallthrough
CT: control target
= control target key end

     0   :  { %12 = vsyncpa [#allocation3], 0  ;;  %s2293_s0 = inlined_call_operand.vmem [shape: bf16[96,64], index: 0, kind: input, shape index: {}]   ;;  %s2294_s1 = inlined_call_operand.hbm [shape: f32[12,8,32], index: 1, kind: input, shape index: {}]   ;;  %s2295_s2 = inlined_call_operand.vmem [shape: bf16[64,128], index: 2, kind: input, shape index: {}]   ;;  %s2296_s3 = inlined_call_operand.vmem [shape: f32[8,128], index: 3, kind: input, shape index: {}]   ;;  %s2297_s4 = inlined_call_operand.vmem [shape: bf16[64,128], index: 4, kind: input, shape index: {}]   ;;  %s2298_s5 = inlined_call_operand.vmem [shape: f32[1,3], index: 5, kind: input, shape index: {}]   ;;  %s2299_s6 = inlined_call_operand.vmem [shape: f32[1,3], index: 6, kind: input, shape index: {}]   ;;  %s2300_s7 = inlined_call_operand.hbm [shape: f32[2,3], index: 7, kind: output, shape index: {}]  }
   0x1   :  { %13 = vsyncpa [#allocation4], 0  ;;  %s1827_s24 = smov [#allocation2]   ;;  %s1779_s28 = scalar_lea.hbm %s2294_s1, 1536 }
   0x2   :  { %s21_s25 = sshll.u32 %s1827_s24, 4  ;;  %p1780_p0 = scmp.ne.s32.totalorder %s2294_s1, %s1779_s28  ;;  %s22_s25 = int_to_ptr.vmem [resolvable:$true] %s21_s25 }
   0x3   :  { %p1783_p1 = scmp.lt.u32.totalorder %s1779_s28, %s2294_s1 }
   0x5   :  { %p1785_p2 = pnand %p1783_p1, %p1780_p0 }
   0x7   :  { %1788 = shalt.err (!%p1785_p2)
}
   0x8   :  { %s1789_s10 = scalar_lea.vmem %s22_s25, 1536  ;;  %p1794_p4 = scmp.lt.s32.totalorder %s22_s25, %s22_s25 }
   0x9   :  { %p1790_p3 = scmp.ne.s32.totalorder %s22_s25, %s1789_s10  ;;  %p1795_p5 = scmp.lt.s32.totalorder %s1789_s10, %s1789_s10 }
   0xb   :  { %p1796_p6 = por %p1795_p5, %p1794_p4 }
   0xd   :  { %p1797_p7 = pnand %p1796_p6, %p1790_p3 }
   0xf   :  { %1800 = shalt.err (!%p1797_p7)
}
  0x10   :  { %s1828_s11 = smov 128   ;;  %s1829_s12 = smov 8  }
  0x11   :  { %27 = dma.hbm_to_vmem [thread:$0]  %s2294_s1, 1536, %s22_s25, [#allocation3], %s1828_s11, %s1828_s11, %s1829_s12  }
  0x12   :  { %1823 = dma.done.wait [#allocation3], 1536  }
  0x13   :  { %1824 = vsyncadd [#allocation3], 4294965760  ;;  %v1830_v0 = vmov 0.0   ;;  %vm1831_vm0 = vmmov 0   ;;  %v1832_v1 = vmov 0   ;;  %v1665_v2 = vld [vmem:[%s2295_s2] sm:$0xff]   ;;  %v237_v36 = vlaneseq }
  0x14   :  { %1509 = vmatprep.subr.bf16.mxu1 %v1830_v0  ;;  %1517 = vmatprep.mubr.msk.bf16.mxu1 %vm1831_vm0, %v1830_v0  ;;  %v1899_v3 = vld [vmem:[%s2297_s4] sm:$0xff]   ;;  %v1667_v4 = vld [vmem:[%s2295_s2 + $0x8] sm:$0xff]   ;;  %v1669_v6 = vld [vmem:[%s2295_s2 + $0x10] sm:$0xff]   ;;  %vm116_vm1 = vcmask 523264   ;;  %s1833_s11 = smov 32   ;;  %s1835_s12 = smov 64  }
  0x15   :  { %1664 = vset.pattern.permute.xlu0 %v1832_v1  ;;  %1489 = vmatprep.subr.bf16.mxu0 %v1665_v2  ;;  %v1908_v5 = vld [vmem:[%s2297_s4 + $0x8] sm:$0xff]   ;;  %v1917_v7 = vld [vmem:[%s2297_s4 + $0x10] sm:$0xff]   ;;  %v1671_v8 = vld [vmem:[%s2295_s2 + $0x18] sm:$0xff]   ;;  %v238_v37 = vshrl.u32 %v237_v36, 7  ;;  %v241_v38 = vand.u32 127, %v237_v36  ;;  %vm1836_vm5 = vmmov 1  }
  0x16   :  { %1490 = vmatpush3.bf16.msra.mxu0 %v1665_v2  ;;  %1510 = vmatpush3.bf16.msra.mxu1 %v1899_v3  ;;  %v1673_v9 = vld [vmem:[%s2293_s0] sm:$0xff]   ;;  %v1930_v10 = vld [vmem:[%s2297_s4 + $0x18] sm:$0xff]   ;;  %v1674_v11 = vld [vmem:[%s2293_s0 + $0x8] sm:$0xff]   ;;  %vm353_vm7 = vcmask 261120   ;;  %vm1306_vm8 = vcmask 259076   ;;  %vm1302_vm9 = vcmask 254976  }
  0x17   :  { %1491 = vmatprep.subr.bf16.mxu0 %v1667_v4  ;;  %1511 = vmatprep.subr.bf16.mxu1 %v1830_v0  ;;  %v1963_v12 = vld [vmem:[%s2296_s3] sm:$0xff]  ;;  %s1834_s3 = smov 96   ;;  %vm239_vm2 = vcmp.lt.s32.totalorder %v238_v37, 4  ;;  %vm242_vm3 = vcmp.lt.s32.totalorder %v241_v38, 32  ;;  %v1675_v61 = vld [vmem:[%s2293_s0 + $0x10] sm:$0xff]   ;;  %v1676_v62 = vld [vmem:[%s2293_s0 + $0x18] sm:$0xff]  }
  0x18   :  { %1497 = vmatprep.mubr.msk.bf16.mxu0 %vm116_vm1, %v1673_v9  ;;  %vm243_vm4 = vmxor %vm239_vm2, %vm242_vm3  ;;  %v1677_v63 = vld [vmem:[%s2293_s0 + $0x20] sm:$0xff]   ;;  %vm1315_vm10 = vcmask 1024   ;;  %s1837_s23 = smov [#allocation5]   ;;  %vm1356_vm11 = vcmask 17408  }
  0x19   :  { %vm244_vm6 = vmxor %vm243_vm4, %vm1836_vm5  ;;  %s1364_s24 = sshll.u32 %s1837_s23, 4  ;;  %s1365_s24 = int_to_ptr.vmem [resolvable:$true] %s1364_s24 }
  0x1a   :  { %1492 = vmatpush3.bf16.msra.mxu0 %v1667_v4  ;;  %1512 = vmatpush3.bf16.msra.mxu1 %v1908_v5  ;;  %v1980_v39 = vsel %vm244_vm6, 1.0, %v1830_v0  ;;  %s1801_s25 = scalar_lea.vmem %s1365_s24, 32  ;;  %p1806_p9 = scmp.lt.s32.totalorder %s1365_s24, %s1365_s24 }
  0x1b   :  { %1493 = vmatprep.subr.bf16.mxu0 %v1669_v6  ;;  %1513 = vmatprep.subr.bf16.mxu1 %v1830_v0  ;;  %p1802_p8 = scmp.ne.s32.totalorder %s1365_s24, %s1801_s25  ;;  %p1807_p10 = scmp.lt.s32.totalorder %s1801_s25, %s1801_s25 }
  0x1d   :  { %p1808_p11 = por %p1807_p10, %p1806_p9 }
  0x1e   :  { %1494 = vmatpush3.bf16.msra.mxu0 %v1669_v6  ;;  %1514 = vmatpush3.bf16.msra.mxu1 %v1917_v7 }
  0x1f   :  { %1495 = vmatprep.subr.bf16.mxu0 %v1671_v8  ;;  %1515 = vmatprep.subr.bf16.mxu1 %v1830_v0  ;;  %p1809_p12 = pnand %p1808_p11, %p1802_p8 }
  0x22   :  { %1496 = vmatpush3.bf16.msra.mxu0 %v1671_v8  ;;  %1516 = vmatpush3.bf16.msra.mxu1 %v1930_v10 }
  0x23   :  { %1521 = vmatprep.subr.bf16.mxu1 %v1830_v0  ;;  %1533 = vmatprep.subr.bf16.mxu0 %v1830_v0 }
  0x25   :  { %1498 = vmatmul.mubr.msk.bf16.vlgmr.msra.gmra.mrb[0].mxu0 %vm116_vm1, %v1674_v11  ;;  %1518 = vmatmul.mubr.bf16.vlgmr.msra.gmra.mrb[0].mxu1 %v1832_v1  ;;  %v1678_v1 = vld [vmem:[%s2293_s0 + $0x28] sm:$0xff]  }
  0x26   :  { %1522 = vmatpush3.bf16.msra.mxu1 %v1899_v3  ;;  %1529 = vmatprep.mubr.msk.bf16.mxu1 %vm1831_vm0, %v1830_v0 }
  0x27   :  { %1523 = vmatprep.subr.bf16.mxu1 %v1830_v0  ;;  %1534 = vmatpush3.bf16.msra.mxu0 %v1899_v3 }
  0x28   :  { %1535 = vmatprep.subr.bf16.mxu0 %v1830_v0  ;;  %1501 = vmatprep.mubr.msk.bf16.mxu0 %vm116_vm1, %v1675_v61 }
  0x2a   :  { %1524 = vmatpush3.bf16.msra.mxu1 %v1908_v5 }
  0x2b   :  { %1525 = vmatprep.subr.bf16.mxu1 %v1830_v0  ;;  %1536 = vmatpush3.bf16.msra.mxu0 %v1908_v5 }
  0x2c   :  { %1537 = vmatprep.subr.bf16.mxu0 %v1830_v0 }
  0x2d   :  { %1502 = vmatmul.mubr.msk.bf16.gmra.mrb[4].mxu0 %vm116_vm1, %v1676_v62 }
  0x2e   :  { %1526 = vmatpush3.bf16.msra.mxu1 %v1917_v7  ;;  %1505 = vmatprep.mubr.msk.bf16.mxu0 %vm116_vm1, %v1677_v63 }
  0x2f   :  { %1527 = vmatprep.subr.bf16.mxu1 %v1830_v0  ;;  %1538 = vmatpush3.bf16.msra.mxu0 %v1917_v7 }
  0x30   :  { %1539 = vmatprep.subr.bf16.mxu0 %v1830_v0 }
  0x32   :  { %1528 = vmatpush3.bf16.msra.mxu1 %v1930_v10 }
  0x33   :  { %1540 = vmatpush3.bf16.msra.mxu0 %v1930_v10  ;;  %1545 = vmatprep.subr.bf16.mxu1 %v1830_v0 }
  0x34   :  { %1557 = vmatprep.subr.bf16.mxu0 %v1830_v0 }
  0x35   :  { %1506 = vmatmul.mubr.msk.bf16.gmra.mrb[8].mxu0 %vm116_vm1, %v1678_v1 }
  0x36   :  { %1541 = vmatprep.mubr.msk.bf16.mxu0 %vm1831_vm0, %v1830_v0 }
  0xf8   :  { %v1965_v13 = vpop.f32.mrb[0].mxu0  ;;  %v308_v14 = vpop.f32.mrb[0].mxu1 }
  0xf9   :  { %v169_v15 = vpop.f32.mrb[1].mxu0  ;;  %v1519_v16 = vpop.f32.mrb[1].mxu1 }
  0xfa   :  { %v217_v17 = vadd.f32 %v1963_v12, %v169_v15  ;;  %v1968_v18 = vpop.f32.mrb[2].mxu0  ;;  %v311_v19 = vpop.f32.mrb[2].mxu1 }
  0xfb   :  { %v172_v20 = vpop.f32.mrb[3].mxu0  ;;  %v1520_v21 = vpop.f32.mrb[3].mxu1 }
  0xfc   :  { %v314_v22 = vadd.f32 %v308_v14, %v217_v17  ;;  %v218_v45 = vadd.f32 %v1963_v12, %v172_v20 }
  0xfe   :  { %1679 = vtanh.f32 %v314_v22  ;;  %v1394_v24 = vmul.f32 -1.442695, %v314_v22 }
 0x100   :  { %1681 = vpow2.f32 %v1394_v24  ;;  %v2023_v8 = vpop.f32.mrb[4].mxu0 }
 0x101   :  { %v2025_v9 = vpop.f32.mrb[5].mxu0 }
 0x102   :  { %v2027_v11 = vpop.f32.mrb[6].mxu0 }
 0x103   :  { %v2029_v14 = vpop.f32.mrb[7].mxu0 }
 0x108   :  { %v1680_v23 = vpop.eup %1679  ;;  %v2031_v15 = vpop.f32.mrb[8].mxu0 }
 0x109   :  { %324 = vrot.lane.b32.xlu0 %v1680_v23, %s1833_s11  ;;  %v2033_v16 = vpop.f32.mrb[9].mxu0 }
 0x10a   :  { %v1682_v25 = vpop.eup %1681  ;;  %v2035_v17 = vpop.f32.mrb[10].mxu0 }
 0x10b   :  { %v318_v26 = vadd.f32 1.0, %v1682_v25  ;;  %v2037_v19 = vpop.f32.mrb[11].mxu0  ;;  %v219_v25 = vadd.f32 %v1965_v13, %v1963_v12 }
 0x10d   :  { %1683 = vrcp.f32 %v318_v26 }
 0x117   :  { %v1684_v27 = vpop.eup %1683 }
 0x118   :  { %v322_v30 = vmul.f32 0.0, %v1684_v27 }
 0x17b   :  { %v325_v28 = vpop.permute.xlu0 %324 }
 0x17c   :  { %v327_v29 = vmul.f32 %v1684_v27, %v325_v28 }
 0x17e   :  { %329 = vrot.lane.b32.xlu0 %v327_v29, %s1833_s11 }
 0x1f0   :  { %v330_v31 = vpop.permute.xlu0 %329 }
 0x1f1   :  { %v332_v32 = vadd.f32 %v330_v31, %v322_v30 }
 0x1f3   :  { %1685 = vtanh.f32 %v332_v32 }
 0x1fd   :  { %v1686_v33 = vpop.eup %1685 }
 0x1fe   :  { %335 = vrot.lane.b32.xlu1 %v1686_v33, %s1833_s11 }
 0x270   :  { %v336_v34 = vpop.permute.xlu1 %335 }
 0x271   :  { %v1973_v35 = vmul.f32 %v1684_v27, %v336_v34 }
 0x273   :  { %350 = vrot.lane.b32.xlu0 %v1973_v35, %s1834_s3  ;;  %347 = vrot.lane.b32.xlu1 %v1973_v35, %s1835_s12 }
 0x2e5   :  { %v351_v40 = vpop.permute.xlu0 %350  ;;  %v348_v41 = vpop.permute.xlu1 %347 }
 0x2e6   :  { %v354_v42 = vsel %vm353_vm7, %v348_v41, %v351_v40 }
 0x2e7   :  { %v355_v43 = vmul.f32 %v1980_v39, %v354_v42 }
 0x2e9   :  { %v356_v44 = vpack.c.bf16 %v355_v43, %v355_v43 }
 0x2eb   :  { %1530 = vmatmul.mubr.msk.bf16.vlgmr.msra.gmra.mrb[4].mxu1 %vm116_vm1, %v356_v44 }
 0x2ec   :  { %1546 = vmatpush3.bf16.msra.mxu1 %v1899_v3  ;;  %1553 = vmatprep.mubr.msk.bf16.mxu1 %vm1831_vm0, %v1830_v0 }
 0x2ed   :  { %1547 = vmatprep.subr.bf16.mxu1 %v1830_v0 }
 0x2f0   :  { %1548 = vmatpush3.bf16.msra.mxu1 %v1908_v5 }
 0x2f1   :  { %1549 = vmatprep.subr.bf16.mxu1 %v1830_v0 }
 0x2f4   :  { %1550 = vmatpush3.bf16.msra.mxu1 %v1917_v7 }
 0x2f5   :  { %1551 = vmatprep.subr.bf16.mxu1 %v1830_v0 }
 0x2f8   :  { %1552 = vmatpush3.bf16.msra.mxu1 %v1930_v10 }
 0x2f9   :  { %1569 = vmatprep.subr.bf16.mxu1 %v1830_v0 }
 0x3be   :  { %v394_v46 = vpop.f32.mrb[4].mxu1 }
 0x3bf   :  { %v400_v47 = vadd.f32 %v394_v46, %v218_v45  ;;  %v1531_v48 = vpop.f32.mrb[5].mxu1 }
 0x3c0   :  { %v397_v49 = vpop.f32.mrb[6].mxu1 }
 0x3c1   :  { %1687 = vtanh.f32 %v400_v47  ;;  %v1532_v50 = vpop.f32.mrb[7].mxu1  ;;  %v1396_v52 = vmul.f32 -1.442695, %v400_v47 }
 0x3c2   :  { %v220_v50 = vadd.f32 %v1968_v18, %v1963_v12 }
 0x3c3   :  { %1689 = vpow2.f32 %v1396_v52 }
 0x3cb   :  { %v1688_v51 = vpop.eup %1687 }
 0x3cc   :  { %410 = vrot.lane.b32.xlu1 %v1688_v51, %s1833_s11 }
 0x3cd   :  { %v1690_v53 = vpop.eup %1689 }
 0x3ce   :  { %v404_v54 = vadd.f32 1.0, %v1690_v53 }
 0x3d0   :  { %1691 = vrcp.f32 %v404_v54 }
 0x3da   :  { %v1692_v55 = vpop.eup %1691 }
 0x3db   :  { %v408_v58 = vmul.f32 %v1692_v55, %v332_v32 }
 0x43e   :  { %v411_v56 = vpop.permute.xlu1 %410 }
 0x43f   :  { %v413_v57 = vmul.f32 %v1692_v55, %v411_v56 }
 0x441   :  { %415 = vrot.lane.b32.xlu0 %v413_v57, %s1833_s11 }
 0x4b3   :  { %v416_v59 = vpop.permute.xlu0 %415 }
 0x4b4   :  { %v418_v60 = vadd.f32 %v416_v59, %v408_v58 }
 0x4b6   :  { %1693 = vtanh.f32 %v418_v60 }
 0x4c0   :  { %v1694_v2 = vpop.eup %1693 }
 0x4c1   :  { %421 = vrot.lane.b32.xlu1 %v1694_v2, %s1833_s11 }
 0x533   :  { %v422_v4 = vpop.permute.xlu1 %421 }
 0x534   :  { %v2017_v6 = vmul.f32 %v1692_v55, %v422_v4 }
 0x536   :  { %437 = vrot.lane.b32.xlu1 %v2017_v6, %s1834_s3  ;;  %434 = vrot.lane.b32.xlu0 %v2017_v6, %s1835_s12 }
 0x5a8   :  { %v438_v20 = vpop.permute.xlu1 %437  ;;  %v435_v21 = vpop.permute.xlu0 %434 }
 0x5a9   :  { %v440_v22 = vsel %vm353_vm7, %v435_v21, %v438_v20 }
 0x5aa   :  { %v441_v23 = vmul.f32 %v1980_v39, %v440_v22 }
 0x5ac   :  { %v442_v24 = vpack.c.bf16 %v441_v23, %v441_v23 }
 0x5ae   :  { %1542 = vmatmul.mubr.msk.bf16.vlgmr.msra.gmra.mrb[12].mxu0 %vm116_vm1, %v442_v24 }
 0x5af   :  { %1558 = vmatpush3.bf16.msra.mxu0 %v1899_v3  ;;  %1565 = vmatprep.mubr.msk.bf16.mxu0 %vm1831_vm0, %v1830_v0 }
 0x5b0   :  { %1559 = vmatprep.subr.bf16.mxu0 %v1830_v0 }
 0x5b3   :  { %1560 = vmatpush3.bf16.msra.mxu0 %v1908_v5 }
 0x5b4   :  { %1561 = vmatprep.subr.bf16.mxu0 %v1830_v0 }
 0x5b7   :  { %1562 = vmatpush3.bf16.msra.mxu0 %v1917_v7 }
 0x5b8   :  { %1563 = vmatprep.subr.bf16.mxu0 %v1830_v0 }
 0x5bb   :  { %1564 = vmatpush3.bf16.msra.mxu0 %v1930_v10 }
 0x5bc   :  { %1581 = vmatprep.subr.bf16.mxu0 %v1830_v0 }
 0x681   :  { %v480_v26 = vpop.f32.mrb[12].mxu0 }
 0x682   :  { %v486_v27 = vadd.f32 %v480_v26, %v219_v25  ;;  %v1543_v28 = vpop.f32.mrb[13].mxu0  ;;  %v221_v26 = vadd.f32 %v1963_v12, %v2025_v9 }
 0x683   :  { %v483_v29 = vpop.f32.mrb[14].mxu0 }
 0x684   :  { %1695 = vtanh.f32 %v486_v27  ;;  %v1544_v30 = vpop.f32.mrb[15].mxu0  ;;  %v1398_v32 = vmul.f32 -1.442695, %v486_v27 }
 0x686   :  { %1697 = vpow2.f32 %v1398_v32 }
 0x68e   :  { %v1696_v31 = vpop.eup %1695 }
 0x68f   :  { %496 = vrot.lane.b32.xlu0 %v1696_v31, %s1833_s11 }
 0x690   :  { %v1698_v33 = vpop.eup %1697 }
 0x691   :  { %v490_v34 = vadd.f32 1.0, %v1698_v33 }
 0x693   :  { %1699 = vrcp.f32 %v490_v34 }
 0x69d   :  { %v1700_v36 = vpop.eup %1699 }
 0x69e   :  { %v494_v13 = vmul.f32 %v1700_v36, %v418_v60 }
 0x701   :  { %v497_v37 = vpop.permute.xlu0 %496 }
 0x702   :  { %v499_v38 = vmul.f32 %v1700_v36, %v497_v37 }
 0x704   :  { %501 = vrot.lane.b32.xlu1 %v499_v38, %s1833_s11 }
 0x776   :  { %v502_v40 = vpop.permute.xlu1 %501 }
 0x777   :  { %v504_v41 = vadd.f32 %v502_v40, %v494_v13 }
 0x779   :  { %1701 = vtanh.f32 %v504_v41 }
 0x783   :  { %v1702_v42 = vpop.eup %1701 }
 0x784   :  { %507 = vrot.lane.b32.xlu0 %v1702_v42, %s1833_s11 }
 0x7f6   :  { %v508_v43 = vpop.permute.xlu0 %507 }
 0x7f7   :  { %v2057_v44 = vmul.f32 %v1700_v36, %v508_v43 }
 0x7f9   :  { %523 = vrot.lane.b32.xlu0 %v2057_v44, %s1834_s3  ;;  %520 = vrot.lane.b32.xlu1 %v2057_v44, %s1835_s12 }
 0x86b   :  { %v524_v45 = vpop.permute.xlu0 %523  ;;  %v521_v46 = vpop.permute.xlu1 %520 }
 0x86c   :  { %v526_v47 = vsel %vm353_vm7, %v521_v46, %v524_v45 }
 0x86d   :  { %v527_v48 = vmul.f32 %v1980_v39, %v526_v47 }
 0x86f   :  { %v528_v49 = vpack.c.bf16 %v527_v48, %v527_v48 }
 0x871   :  { %1554 = vmatmul.mubr.msk.bf16.vlgmr.msra.gmra.mrb[8].mxu1 %vm116_vm1, %v528_v49 }
 0x872   :  { %1570 = vmatpush3.bf16.msra.mxu1 %v1899_v3  ;;  %1577 = vmatprep.mubr.msk.bf16.mxu1 %vm1831_vm0, %v1830_v0 }
 0x873   :  { %1571 = vmatprep.subr.bf16.mxu1 %v1830_v0 }
 0x876   :  { %1572 = vmatpush3.bf16.msra.mxu1 %v1908_v5 }
 0x877   :  { %1573 = vmatprep.subr.bf16.mxu1 %v1830_v0 }
 0x87a   :  { %1574 = vmatpush3.bf16.msra.mxu1 %v1917_v7 }
 0x87b   :  { %1575 = vmatprep.subr.bf16.mxu1 %v1830_v0 }
 0x87e   :  { %1576 = vmatpush3.bf16.msra.mxu1 %v1930_v10 }
 0x87f   :  { %1593 = vmatprep.subr.bf16.mxu1 %v1830_v0 }
 0x944   :  { %v566_v51 = vpop.f32.mrb[8].mxu1 }
 0x945   :  { %v572_v52 = vadd.f32 %v566_v51, %v220_v50  ;;  %v1555_v53 = vpop.f32.mrb[9].mxu1  ;;  %v222_v51 = vadd.f32 %v1963_v12, %v2029_v14 }
 0x946   :  { %v569_v54 = vpop.f32.mrb[10].mxu1 }
 0x947   :  { %1703 = vtanh.f32 %v572_v52  ;;  %v1556_v55 = vpop.f32.mrb[11].mxu1  ;;  %v1400_v57 = vmul.f32 -1.442695, %v572_v52 }
 0x949   :  { %1705 = vpow2.f32 %v1400_v57 }
 0x951   :  { %v1704_v56 = vpop.eup %1703 }
 0x952   :  { %582 = vrot.lane.b32.xlu1 %v1704_v56, %s1833_s11 }
 0x953   :  { %v1706_v58 = vpop.eup %1705 }
 0x954   :  { %v576_v59 = vadd.f32 1.0, %v1706_v58 }
 0x956   :  { %1707 = vrcp.f32 %v576_v59 }
 0x960   :  { %v1708_v60 = vpop.eup %1707 }
 0x961   :  { %v580_v18 = vmul.f32 %v1708_v60, %v504_v41 }
 0x9c4   :  { %v583_v61 = vpop.permute.xlu1 %582 }
 0x9c5   :  { %v585_v62 = vmul.f32 %v1708_v60, %v583_v61 }
 0x9c7   :  { %587 = vrot.lane.b32.xlu0 %v585_v62, %s1833_s11 }
 0xa39   :  { %v588_v63 = vpop.permute.xlu0 %587 }
 0xa3a   :  { %v590_v1 = vadd.f32 %v588_v63, %v580_v18 }
 0xa3c   :  { %1709 = vtanh.f32 %v590_v1 }
 0xa46   :  { %v1710_v2 = vpop.eup %1709 }
 0xa47   :  { %593 = vrot.lane.b32.xlu1 %v1710_v2, %s1833_s11 }
 0xab9   :  { %v594_v4 = vpop.permute.xlu1 %593 }
 0xaba   :  { %v2081_v20 = vmul.f32 %v1708_v60, %v594_v4 }
 0xabc   :  { %609 = vrot.lane.b32.xlu1 %v2081_v20, %s1834_s3  ;;  %606 = vrot.lane.b32.xlu0 %v2081_v20, %s1835_s12 }
 0xb2e   :  { %v610_v21 = vpop.permute.xlu1 %609  ;;  %v607_v22 = vpop.permute.xlu0 %606 }
 0xb2f   :  { %v612_v23 = vsel %vm353_vm7, %v607_v22, %v610_v21 }
 0xb30   :  { %v613_v24 = vmul.f32 %v1980_v39, %v612_v23 }
 0xb32   :  { %v614_v25 = vpack.c.bf16 %v613_v24, %v613_v24 }
 0xb34   :  { %1566 = vmatmul.mubr.msk.bf16.vlgmr.msra.gmra.mrb[16].mxu0 %vm116_vm1, %v614_v25 }
 0xb35   :  { %1582 = vmatpush3.bf16.msra.mxu0 %v1899_v3  ;;  %1589 = vmatprep.mubr.msk.bf16.mxu0 %vm1831_vm0, %v1830_v0 }
 0xb36   :  { %1583 = vmatprep.subr.bf16.mxu0 %v1830_v0 }
 0xb39   :  { %1584 = vmatpush3.bf16.msra.mxu0 %v1908_v5 }
 0xb3a   :  { %1585 = vmatprep.subr.bf16.mxu0 %v1830_v0 }
 0xb3d   :  { %1586 = vmatpush3.bf16.msra.mxu0 %v1917_v7 }
 0xb3e   :  { %1587 = vmatprep.subr.bf16.mxu0 %v1830_v0 }
 0xb41   :  { %1588 = vmatpush3.bf16.msra.mxu0 %v1930_v10 }
 0xb42   :  { %1605 = vmatprep.subr.bf16.mxu0 %v1830_v0 }
 0xc07   :  { %v652_v27 = vpop.f32.mrb[16].mxu0 }
 0xc08   :  { %v658_v28 = vadd.f32 %v652_v27, %v221_v26  ;;  %v1567_v29 = vpop.f32.mrb[17].mxu0  ;;  %v223_v27 = vadd.f32 %v2023_v8, %v1963_v12 }
 0xc09   :  { %v655_v30 = vpop.f32.mrb[18].mxu0 }
 0xc0a   :  { %1711 = vtanh.f32 %v658_v28  ;;  %v1568_v31 = vpop.f32.mrb[19].mxu0  ;;  %v1402_v33 = vmul.f32 -1.442695, %v658_v28 }
 0xc0c   :  { %1713 = vpow2.f32 %v1402_v33 }
 0xc14   :  { %v1712_v32 = vpop.eup %1711 }
 0xc15   :  { %668 = vrot.lane.b32.xlu0 %v1712_v32, %s1833_s11 }
 0xc16   :  { %v1714_v34 = vpop.eup %1713 }
 0xc17   :  { %v662_v36 = vadd.f32 1.0, %v1714_v34 }
 0xc19   :  { %1715 = vrcp.f32 %v662_v36 }
 0xc23   :  { %v1716_v37 = vpop.eup %1715 }
 0xc24   :  { %v666_v9 = vmul.f32 %v1716_v37, %v590_v1 }
 0xc87   :  { %v669_v38 = vpop.permute.xlu0 %668 }
 0xc88   :  { %v671_v13 = vmul.f32 %v1716_v37, %v669_v38 }
 0xc8a   :  { %673 = vrot.lane.b32.xlu1 %v671_v13, %s1833_s11 }
 0xcfc   :  { %v674_v40 = vpop.permute.xlu1 %673 }
 0xcfd   :  { %v676_v41 = vadd.f32 %v674_v40, %v666_v9 }
 0xcff   :  { %1717 = vtanh.f32 %v676_v41 }
 0xd09   :  { %v1718_v42 = vpop.eup %1717 }
 0xd0a   :  { %679 = vrot.lane.b32.xlu0 %v1718_v42, %s1833_s11 }
 0xd7c   :  { %v680_v43 = vpop.permute.xlu0 %679 }
 0xd7d   :  { %v2105_v45 = vmul.f32 %v1716_v37, %v680_v43 }
 0xd7f   :  { %695 = vrot.lane.b32.xlu0 %v2105_v45, %s1834_s3  ;;  %692 = vrot.lane.b32.xlu1 %v2105_v45, %s1835_s12 }
 0xdf1   :  { %v696_v46 = vpop.permute.xlu0 %695  ;;  %v693_v47 = vpop.permute.xlu1 %692 }
 0xdf2   :  { %v698_v48 = vsel %vm353_vm7, %v693_v47, %v696_v46 }
 0xdf3   :  { %v699_v49 = vmul.f32 %v1980_v39, %v698_v48 }
 0xdf5   :  { %v700_v50 = vpack.c.bf16 %v699_v49, %v699_v49 }
 0xdf7   :  { %1578 = vmatmul.mubr.msk.bf16.vlgmr.msra.gmra.mrb[12].mxu1 %vm116_vm1, %v700_v50 }
 0xdf8   :  { %1594 = vmatpush3.bf16.msra.mxu1 %v1899_v3  ;;  %1601 = vmatprep.mubr.msk.bf16.mxu1 %vm1831_vm0, %v1830_v0 }
 0xdf9   :  { %1595 = vmatprep.subr.bf16.mxu1 %v1830_v0 }
 0xdfc   :  { %1596 = vmatpush3.bf16.msra.mxu1 %v1908_v5 }
 0xdfd   :  { %1597 = vmatprep.subr.bf16.mxu1 %v1830_v0 }
 0xe00   :  { %1598 = vmatpush3.bf16.msra.mxu1 %v1917_v7 }
 0xe01   :  { %1599 = vmatprep.subr.bf16.mxu1 %v1830_v0 }
 0xe04   :  { %1600 = vmatpush3.bf16.msra.mxu1 %v1930_v10 }
 0xe05   :  { %1617 = vmatprep.subr.bf16.mxu1 %v1830_v0 }
 0xeca   :  { %v738_v52 = vpop.f32.mrb[12].mxu1 }
 0xecb   :  { %v744_v53 = vadd.f32 %v738_v52, %v222_v51  ;;  %v1579_v54 = vpop.f32.mrb[13].mxu1  ;;  %v224_v52 = vadd.f32 %v2027_v11, %v1963_v12 }
 0xecc   :  { %v741_v55 = vpop.f32.mrb[14].mxu1 }
 0xecd   :  { %1719 = vtanh.f32 %v744_v53  ;;  %v1580_v56 = vpop.f32.mrb[15].mxu1  ;;  %v1404_v58 = vmul.f32 -1.442695, %v744_v53 }
 0xecf   :  { %1721 = vpow2.f32 %v1404_v58 }
 0xed7   :  { %v1720_v57 = vpop.eup %1719 }
 0xed8   :  { %754 = vrot.lane.b32.xlu1 %v1720_v57, %s1833_s11 }
 0xed9   :  { %v1722_v59 = vpop.eup %1721 }
 0xeda   :  { %v748_v60 = vadd.f32 1.0, %v1722_v59 }
 0xedc   :  { %1723 = vrcp.f32 %v748_v60 }
 0xee6   :  { %v1724_v61 = vpop.eup %1723 }
 0xee7   :  { %v752_v14 = vmul.f32 %v1724_v61, %v676_v41 }
 0xf4a   :  { %v755_v62 = vpop.permute.xlu1 %754 }
 0xf4b   :  { %v757_v18 = vmul.f32 %v1724_v61, %v755_v62 }
 0xf4d   :  { %759 = vrot.lane.b32.xlu0 %v757_v18, %s1833_s11 }
 0xfbf   :  { %v760_v63 = vpop.permute.xlu0 %759 }
 0xfc0   :  { %v762_v1 = vadd.f32 %v760_v63, %v752_v14 }
 0xfc2   :  { %1725 = vtanh.f32 %v762_v1 }
 0xfcc   :  { %v1726_v2 = vpop.eup %1725 }
 0xfcd   :  { %765 = vrot.lane.b32.xlu1 %v1726_v2, %s1833_s11 }
0x103f   :  { %v766_v4 = vpop.permute.xlu1 %765 }
0x1040   :  { %v2129_v21 = vmul.f32 %v1724_v61, %v766_v4 }
0x1042   :  { %781 = vrot.lane.b32.xlu1 %v2129_v21, %s1834_s3  ;;  %778 = vrot.lane.b32.xlu0 %v2129_v21, %s1835_s12 }
0x10b4   :  { %v782_v22 = vpop.permute.xlu1 %781  ;;  %v779_v23 = vpop.permute.xlu0 %778 }
0x10b5   :  { %v784_v24 = vsel %vm353_vm7, %v779_v23, %v782_v22 }
0x10b6   :  { %v785_v25 = vmul.f32 %v1980_v39, %v784_v24 }
0x10b8   :  { %v786_v26 = vpack.c.bf16 %v785_v25, %v785_v25 }
0x10ba   :  { %1590 = vmatmul.mubr.msk.bf16.vlgmr.msra.gmra.mrb[20].mxu0 %vm116_vm1, %v786_v26 }
0x10bb   :  { %1606 = vmatpush3.bf16.msra.mxu0 %v1899_v3  ;;  %1613 = vmatprep.mubr.msk.bf16.mxu0 %vm1831_vm0, %v1830_v0 }
0x10bc   :  { %1607 = vmatprep.subr.bf16.mxu0 %v1830_v0 }
0x10bf   :  { %1608 = vmatpush3.bf16.msra.mxu0 %v1908_v5 }
0x10c0   :  { %1609 = vmatprep.subr.bf16.mxu0 %v1830_v0 }
0x10c3   :  { %1610 = vmatpush3.bf16.msra.mxu0 %v1917_v7 }
0x10c4   :  { %1611 = vmatprep.subr.bf16.mxu0 %v1830_v0 }
0x10c7   :  { %1612 = vmatpush3.bf16.msra.mxu0 %v1930_v10 }
0x10c8   :  { %1629 = vmatprep.subr.bf16.mxu0 %v1830_v0 }
0x118d   :  { %v824_v28 = vpop.f32.mrb[20].mxu0 }
0x118e   :  { %v830_v29 = vadd.f32 %v824_v28, %v223_v27  ;;  %v1591_v30 = vpop.f32.mrb[21].mxu0  ;;  %v225_v28 = vadd.f32 %v1963_v12, %v2033_v16 }
0x118f   :  { %v827_v31 = vpop.f32.mrb[22].mxu0 }
0x1190   :  { %1727 = vtanh.f32 %v830_v29  ;;  %v1592_v32 = vpop.f32.mrb[23].mxu0  ;;  %v1406_v34 = vmul.f32 -1.442695, %v830_v29 }
0x1192   :  { %1729 = vpow2.f32 %v1406_v34 }
0x119a   :  { %v1728_v33 = vpop.eup %1727 }
0x119b   :  { %840 = vrot.lane.b32.xlu0 %v1728_v33, %s1833_s11 }
0x119c   :  { %v1730_v36 = vpop.eup %1729 }
0x119d   :  { %v834_v37 = vadd.f32 1.0, %v1730_v36 }
0x119f   :  { %1731 = vrcp.f32 %v834_v37 }
0x11a9   :  { %v1732_v38 = vpop.eup %1731 }
0x11aa   :  { %v838_v8 = vmul.f32 %v1732_v38, %v762_v1 }
0x120d   :  { %v841_v13 = vpop.permute.xlu0 %840 }
0x120e   :  { %v843_v9 = vmul.f32 %v1732_v38, %v841_v13 }
0x1210   :  { %845 = vrot.lane.b32.xlu1 %v843_v9, %s1833_s11 }
0x1282   :  { %v846_v40 = vpop.permute.xlu1 %845 }
0x1283   :  { %v848_v41 = vadd.f32 %v846_v40, %v838_v8 }
0x1285   :  { %1733 = vtanh.f32 %v848_v41 }
0x128f   :  { %v1734_v42 = vpop.eup %1733 }
0x1290   :  { %851 = vrot.lane.b32.xlu0 %v1734_v42, %s1833_s11 }
0x1302   :  { %v852_v43 = vpop.permute.xlu0 %851 }
0x1303   :  { %v2153_v46 = vmul.f32 %v1732_v38, %v852_v43 }
0x1305   :  { %867 = vrot.lane.b32.xlu0 %v2153_v46, %s1834_s3  ;;  %864 = vrot.lane.b32.xlu1 %v2153_v46, %s1835_s12 }
0x1377   :  { %v868_v47 = vpop.permute.xlu0 %867  ;;  %v865_v48 = vpop.permute.xlu1 %864 }
0x1378   :  { %v870_v49 = vsel %vm353_vm7, %v865_v48, %v868_v47 }
0x1379   :  { %v871_v50 = vmul.f32 %v1980_v39, %v870_v49 }
0x137b   :  { %v872_v51 = vpack.c.bf16 %v871_v50, %v871_v50 }
0x137d   :  { %1602 = vmatmul.mubr.msk.bf16.vlgmr.msra.gmra.mrb[16].mxu1 %vm116_vm1, %v872_v51 }
0x137e   :  { %1618 = vmatpush3.bf16.msra.mxu1 %v1899_v3  ;;  %1625 = vmatprep.mubr.msk.bf16.mxu1 %vm1831_vm0, %v1830_v0 }
0x137f   :  { %1619 = vmatprep.subr.bf16.mxu1 %v1830_v0 }
0x1382   :  { %1620 = vmatpush3.bf16.msra.mxu1 %v1908_v5 }
0x1383   :  { %1621 = vmatprep.subr.bf16.mxu1 %v1830_v0 }
0x1386   :  { %1622 = vmatpush3.bf16.msra.mxu1 %v1917_v7 }
0x1387   :  { %1623 = vmatprep.subr.bf16.mxu1 %v1830_v0 }
0x138a   :  { %1624 = vmatpush3.bf16.msra.mxu1 %v1930_v10 }
0x138b   :  { %1641 = vmatprep.subr.bf16.mxu1 %v1830_v0 }
0x1450   :  { %v910_v53 = vpop.f32.mrb[16].mxu1 }
0x1451   :  { %v916_v54 = vadd.f32 %v910_v53, %v224_v52  ;;  %v1603_v55 = vpop.f32.mrb[17].mxu1  ;;  %v226_v53 = vadd.f32 %v1963_v12, %v2037_v19 }
0x1452   :  { %v913_v56 = vpop.f32.mrb[18].mxu1 }
0x1453   :  { %1735 = vtanh.f32 %v916_v54  ;;  %v1604_v57 = vpop.f32.mrb[19].mxu1  ;;  %v1408_v59 = vmul.f32 -1.442695, %v916_v54 }
0x1455   :  { %1737 = vpow2.f32 %v1408_v59 }
0x145d   :  { %v1736_v58 = vpop.eup %1735 }
0x145e   :  { %926 = vrot.lane.b32.xlu1 %v1736_v58, %s1833_s11 }
0x145f   :  { %v1738_v60 = vpop.eup %1737 }
0x1460   :  { %v920_v61 = vadd.f32 1.0, %v1738_v60 }
0x1462   :  { %1739 = vrcp.f32 %v920_v61 }
0x146c   :  { %v1740_v62 = vpop.eup %1739 }
0x146d   :  { %v924_v11 = vmul.f32 %v1740_v62, %v848_v41 }
0x14d0   :  { %v927_v18 = vpop.permute.xlu1 %926 }
0x14d1   :  { %v929_v14 = vmul.f32 %v1740_v62, %v927_v18 }
0x14d3   :  { %931 = vrot.lane.b32.xlu0 %v929_v14, %s1833_s11 }
0x1545   :  { %v932_v63 = vpop.permute.xlu0 %931 }
0x1546   :  { %v934_v1 = vadd.f32 %v932_v63, %v924_v11 }
0x1548   :  { %1741 = vtanh.f32 %v934_v1 }
0x1552   :  { %v1742_v2 = vpop.eup %1741 }
0x1553   :  { %937 = vrot.lane.b32.xlu1 %v1742_v2, %s1833_s11 }
0x15c5   :  { %v938_v4 = vpop.permute.xlu1 %937 }
0x15c6   :  { %v2177_v22 = vmul.f32 %v1740_v62, %v938_v4 }
0x15c8   :  { %953 = vrot.lane.b32.xlu1 %v2177_v22, %s1834_s3  ;;  %950 = vrot.lane.b32.xlu0 %v2177_v22, %s1835_s12 }
0x163a   :  { %v954_v23 = vpop.permute.xlu1 %953  ;;  %v951_v24 = vpop.permute.xlu0 %950 }
0x163b   :  { %v956_v25 = vsel %vm353_vm7, %v951_v24, %v954_v23  ;;  %v227_v24 = vadd.f32 %v2031_v15, %v1963_v12 }
0x163c   :  { %v957_v26 = vmul.f32 %v1980_v39, %v956_v25 }
0x163e   :  { %v958_v27 = vpack.c.bf16 %v957_v26, %v957_v26 }
0x1640   :  { %1614 = vmatmul.mubr.msk.bf16.vlgmr.msra.gmra.mrb[24].mxu0 %vm116_vm1, %v958_v27 }
0x1641   :  { %1630 = vmatpush3.bf16.msra.mxu0 %v1899_v3  ;;  %1637 = vmatprep.mubr.msk.bf16.mxu0 %vm1831_vm0, %v1830_v0 }
0x1642   :  { %1631 = vmatprep.subr.bf16.mxu0 %v1830_v0 }
0x1645   :  { %1632 = vmatpush3.bf16.msra.mxu0 %v1908_v5 }
0x1646   :  { %1633 = vmatprep.subr.bf16.mxu0 %v1830_v0 }
0x1649   :  { %1634 = vmatpush3.bf16.msra.mxu0 %v1917_v7 }
0x164a   :  { %1635 = vmatprep.subr.bf16.mxu0 %v1830_v0 }
0x164d   :  { %1636 = vmatpush3.bf16.msra.mxu0 %v1930_v10 }
0x1713   :  { %v996_v29 = vpop.f32.mrb[24].mxu0 }
0x1714   :  { %v1002_v30 = vadd.f32 %v996_v29, %v225_v28  ;;  %v1615_v31 = vpop.f32.mrb[25].mxu0 }
0x1715   :  { %v999_v32 = vpop.f32.mrb[26].mxu0 }
0x1716   :  { %1743 = vtanh.f32 %v1002_v30  ;;  %v1616_v33 = vpop.f32.mrb[27].mxu0  ;;  %v1410_v36 = vmul.f32 -1.442695, %v1002_v30 }
0x1718   :  { %1745 = vpow2.f32 %v1410_v36 }
0x1720   :  { %v1744_v34 = vpop.eup %1743 }
0x1721   :  { %1012 = vrot.lane.b32.xlu0 %v1744_v34, %s1833_s11 }
0x1722   :  { %v1746_v37 = vpop.eup %1745 }
0x1723   :  { %v1006_v38 = vadd.f32 1.0, %v1746_v37 }
0x1725   :  { %1747 = vrcp.f32 %v1006_v38 }
0x172f   :  { %v1748_v13 = vpop.eup %1747 }
0x1730   :  { %v1010_v16 = vmul.f32 %v1748_v13, %v934_v1 }
0x1793   :  { %v1013_v9 = vpop.permute.xlu0 %1012 }
0x1794   :  { %v1015_v8 = vmul.f32 %v1748_v13, %v1013_v9 }
0x1796   :  { %1017 = vrot.lane.b32.xlu1 %v1015_v8, %s1833_s11 }
0x1808   :  { %v1018_v40 = vpop.permute.xlu1 %1017 }
0x1809   :  { %v1020_v41 = vadd.f32 %v1018_v40, %v1010_v16 }
0x180b   :  { %1749 = vtanh.f32 %v1020_v41 }
0x1815   :  { %v1750_v42 = vpop.eup %1749 }
0x1816   :  { %1023 = vrot.lane.b32.xlu0 %v1750_v42, %s1833_s11 }
0x1888   :  { %v1024_v43 = vpop.permute.xlu0 %1023 }
0x1889   :  { %v2200_v47 = vmul.f32 %v1748_v13, %v1024_v43 }
0x188b   :  { %1039 = vrot.lane.b32.xlu0 %v2200_v47, %s1834_s3  ;;  %1036 = vrot.lane.b32.xlu1 %v2200_v47, %s1835_s12 }
0x18fd   :  { %v1040_v48 = vpop.permute.xlu0 %1039  ;;  %v1037_v49 = vpop.permute.xlu1 %1036 }
0x18fe   :  { %v1042_v50 = vsel %vm353_vm7, %v1037_v49, %v1040_v48  ;;  %v228_v49 = vadd.f32 %v2035_v17, %v1963_v12  ;;  %v1028_v12 = vld [vmem:[#allocation2 + $0x40] sm:$0xff]  ;;  %v1200_v17 = vld [vmem:[#allocation2 + $0x50] sm:$0xff] }
0x18ff   :  { %v1043_v51 = vmul.f32 %v1980_v39, %v1042_v50 }
0x1901   :  { %v1044_v52 = vpack.c.bf16 %v1043_v51, %v1043_v51 }
0x1903   :  { %1626 = vmatmul.mubr.msk.bf16.vlgmr.msra.gmra.mrb[20].mxu1 %vm116_vm1, %v1044_v52 }
0x1904   :  { %1642 = vmatpush3.bf16.msra.mxu1 %v1899_v3  ;;  %1649 = vmatprep.mubr.msk.bf16.mxu1 %vm1831_vm0, %v1830_v0 }
0x1905   :  { %1643 = vmatprep.subr.bf16.mxu1 %v1830_v0 }
0x1908   :  { %1644 = vmatpush3.bf16.msra.mxu1 %v1908_v5 }
0x1909   :  { %1645 = vmatprep.subr.bf16.mxu1 %v1830_v0 }
0x190c   :  { %1646 = vmatpush3.bf16.msra.mxu1 %v1917_v7 }
0x190d   :  { %1647 = vmatprep.subr.bf16.mxu1 %v1830_v0 }
0x1910   :  { %1648 = vmatpush3.bf16.msra.mxu1 %v1930_v10 }
0x19d6   :  { %v1082_v54 = vpop.f32.mrb[20].mxu1 }
0x19d7   :  { %v1088_v3 = vadd.f32 %v1082_v54, %v226_v53  ;;  %v1627_v55 = vpop.f32.mrb[21].mxu1 }
0x19d8   :  { %v1085_v56 = vpop.f32.mrb[22].mxu1  ;;  %v339_v55 = vld [vmem:[#allocation2] sm:$0xff] }
0x19d9   :  { %1751 = vtanh.f32 %v1088_v3  ;;  %v1628_v57 = vpop.f32.mrb[23].mxu1  ;;  %v1412_v5 = vmul.f32 -1.442695, %v1088_v3  ;;  %v512_v56 = vld [vmem:[#allocation2 + $0x10] sm:$0xff] }
0x19da   :  { %v856_v57 = vld [vmem:[#allocation2 + $0x30] sm:$0xff] }
0x19db   :  { %1753 = vpow2.f32 %v1412_v5 }
0x19e3   :  { %v1752_v58 = vpop.eup %1751 }
0x19e4   :  { %1098 = vrot.lane.b32.xlu1 %v1752_v58, %s1833_s11 }
0x19e5   :  { %v1754_v59 = vpop.eup %1753 }
0x19e6   :  { %v1092_v7 = vadd.f32 1.0, %v1754_v59 }
0x19e8   :  { %1755 = vrcp.f32 %v1092_v7 }
0x19f2   :  { %v1756_v0 = vpop.eup %1755 }
0x19f3   :  { %v1096_v19 = vmul.f32 %v1756_v0, %v1020_v41 }
0x1a56   :  { %v1099_v60 = vpop.permute.xlu1 %1098 }
0x1a57   :  { %v1101_v10 = vmul.f32 %v1756_v0, %v1099_v60 }
0x1a59   :  { %1103 = vrot.lane.b32.xlu0 %v1101_v10, %s1833_s11  ;;  %v426_v10 = vld [vmem:[#allocation2 + $0x8] sm:$0xff] }
0x1acb   :  { %v1104_v61 = vpop.permute.xlu0 %1103 }
0x1acc   :  { %v1106_v62 = vadd.f32 %v1104_v61, %v1096_v19  ;;  %v1286_v19 = vld [vmem:[#allocation2 + $0x58] sm:$0xff] }
0x1acd   :  { %v598_v61 = vld [vmem:[#allocation2 + $0x18] sm:$0xff] }
0x1ace   :  { %1757 = vtanh.f32 %v1106_v62 }
0x1ad8   :  { %v1758_v18 = vpop.eup %1757 }
0x1ad9   :  { %1109 = vrot.lane.b32.xlu1 %v1758_v18, %s1833_s11  ;;  %v942_v18 = vld [vmem:[#allocation2 + $0x38] sm:$0xff] }
0x1b4b   :  { %v1110_v14 = vpop.permute.xlu1 %1109 }
0x1b4c   :  { %v2223_v11 = vmul.f32 %v1756_v0, %v1110_v14  ;;  %v1114_v14 = vld [vmem:[#allocation2 + $0x48] sm:$0xff] }
0x1b4e   :  { %1125 = vrot.lane.b32.xlu1 %v2223_v11, %s1834_s3  ;;  %1122 = vrot.lane.b32.xlu0 %v2223_v11, %s1835_s12 }
0x1bc0   :  { %v1126_v63 = vpop.permute.xlu1 %1125  ;;  %v1123_v1 = vpop.permute.xlu0 %1122 }
0x1bc1   :  { %v1128_v2 = vsel %vm353_vm7, %v1123_v1, %v1126_v63 }
0x1bc2   :  { %v1129_v4 = vmul.f32 %v1980_v39, %v1128_v2 }
0x1bc4   :  { %v1130_v23 = vpack.c.bf16 %v1129_v4, %v1129_v4 }
0x1bc6   :  { %1638 = vmatmul.mubr.msk.bf16.vlgmr.msra.gmra.mrb[28].mxu0 %vm116_vm1, %v1130_v23 }
0x1c99   :  { %v1168_v25 = vpop.f32.mrb[28].mxu0 }
0x1c9a   :  { %v1174_v26 = vadd.f32 %v1168_v25, %v227_v24  ;;  %v1639_v27 = vpop.f32.mrb[29].mxu0 }
0x1c9b   :  { %v1171_v28 = vpop.f32.mrb[30].mxu0 }
0x1c9c   :  { %1759 = vtanh.f32 %v1174_v26  ;;  %v1640_v29 = vpop.f32.mrb[31].mxu0  ;;  %v1414_v31 = vmul.f32 -1.442695, %v1174_v26 }
0x1c9e   :  { %1761 = vpow2.f32 %v1414_v31 }
0x1ca6   :  { %v1760_v30 = vpop.eup %1759 }
0x1ca7   :  { %1184 = vrot.lane.b32.xlu0 %v1760_v30, %s1833_s11 }
0x1ca8   :  { %v1762_v32 = vpop.eup %1761 }
0x1ca9   :  { %v1178_v33 = vadd.f32 1.0, %v1762_v32 }
0x1cab   :  { %1763 = vrcp.f32 %v1178_v33 }
0x1cb5   :  { %v1764_v34 = vpop.eup %1763 }
0x1cb6   :  { %v1182_v15 = vmul.f32 %v1764_v34, %v1106_v62  ;;  %v770_v62 = vld [vmem:[#allocation2 + $0x28] sm:$0xff] }
0x1d19   :  { %v1185_v36 = vpop.permute.xlu0 %1184 }
0x1d1a   :  { %v1187_v37 = vmul.f32 %v1764_v34, %v1185_v36 }
0x1d1c   :  { %1189 = vrot.lane.b32.xlu1 %v1187_v37, %s1833_s11 }
0x1d8e   :  { %v1190_v38 = vpop.permute.xlu1 %1189 }
0x1d8f   :  { %v1192_v13 = vadd.f32 %v1190_v38, %v1182_v15 }
0x1d91   :  { %1765 = vtanh.f32 %v1192_v13 }
0x1d9b   :  { %v1766_v9 = vpop.eup %1765 }
0x1d9c   :  { %1195 = vrot.lane.b32.xlu0 %v1766_v9, %s1833_s11 }
0x1e0e   :  { %v1196_v8 = vpop.permute.xlu0 %1195 }
0x1e0f   :  { %v2237_v16 = vmul.f32 %v1764_v34, %v1196_v8 }
0x1e11   :  { %1211 = vrot.lane.b32.xlu0 %v2237_v16, %s1834_s3  ;;  %1208 = vrot.lane.b32.xlu1 %v2237_v16, %s1835_s12 }
0x1e83   :  { %v1212_v40 = vpop.permute.xlu0 %1211  ;;  %v1209_v41 = vpop.permute.xlu1 %1208 }
0x1e84   :  { %v1214_v42 = vsel %vm353_vm7, %v1209_v41, %v1212_v40 }
0x1e85   :  { %v1215_v43 = vmul.f32 %v1980_v39, %v1214_v42  ;;  %v684_v39 = vld [vmem:[#allocation2 + $0x20] sm:$0xff] }
0x1e87   :  { %v1216_v48 = vpack.c.bf16 %v1215_v43, %v1215_v43 }
0x1e89   :  { %1650 = vmatmul.mubr.msk.bf16.vlgmr.msra.gmra.mrb[24].mxu1 %vm116_vm1, %v1216_v48 }
0x1f5c   :  { %v1254_v50 = vpop.f32.mrb[24].mxu1 }
0x1f5d   :  { %v1260_v51 = vadd.f32 %v1254_v50, %v228_v49  ;;  %v1651_v52 = vpop.f32.mrb[25].mxu1 }
0x1f5e   :  { %v1257_v53 = vpop.f32.mrb[26].mxu1 }
0x1f5f   :  { %1767 = vtanh.f32 %v1260_v51  ;;  %v1652_v54 = vpop.f32.mrb[27].mxu1  ;;  %v1416_v58 = vmul.f32 -1.442695, %v1260_v51 }
0x1f61   :  { %1769 = vpow2.f32 %v1416_v58 }
0x1f69   :  { %v1768_v3 = vpop.eup %1767 }
0x1f6a   :  { %1270 = vrot.lane.b32.xlu1 %v1768_v3, %s1833_s11 }
0x1f6b   :  { %v1770_v5 = vpop.eup %1769 }
0x1f6c   :  { %v1264_v59 = vadd.f32 1.0, %v1770_v5 }
0x1f6e   :  { %341 = vrot.lane.b32.xlu1 %v339_v55, %s1835_s12  ;;  %1771 = vrcp.f32 %v1264_v59 }
0x1f72   :  { %514 = vrot.lane.b32.xlu1 %v512_v56, %s1835_s12 }
0x1f76   :  { %686 = vrot.lane.b32.xlu1 %v684_v39, %s1835_s12 }
0x1f78   :  { %v1772_v7 = vpop.eup %1771 }
0x1f79   :  { %v1268_v63 = vmul.f32 %v1772_v7, %v1192_v13 }
0x1f7a   :  { %858 = vrot.lane.b32.xlu1 %v856_v57, %s1835_s12 }
0x1f7e   :  { %1030 = vrot.lane.b32.xlu1 %v1028_v12, %s1835_s12 }
0x1f82   :  { %1202 = vrot.lane.b32.xlu1 %v1200_v17, %s1835_s12 }
0x1f86   :  { %1288 = vrot.lane.b32.xlu1 %v1286_v19, %s1835_s12 }
0x1fdc   :  { %v1271_v0 = vpop.permute.xlu1 %1270 }
0x1fdd   :  { %v1273_v60 = vmul.f32 %v1772_v7, %v1271_v0 }
0x1fdf   :  { %1275 = vrot.lane.b32.xlu0 %v1273_v60, %s1833_s11 }
0x1fe0   :  { %v342_v23 = vpop.permute.xlu1 %341 }
0x1fe1   :  { %v344_v26 = vmul.f32 %v342_v23, %v1973_v35 }
0x1fe3   :  { %428 = vrot.lane.b32.xlu0 %v426_v10, %s1835_s12 }
0x1fe4   :  { %v515_v27 = vpop.permute.xlu1 %514 }
0x1fe5   :  { %v517_v30 = vmul.f32 %v515_v27, %v2057_v44  ;;  %v1418_v27 = vld [vmem:[%s2299_s6] ss:$0 sm:$0xff] }
0x1fe7   :  { %600 = vrot.lane.b32.xlu0 %v598_v61, %s1835_s12 }
0x1fe8   :  { %v687_v33 = vpop.permute.xlu1 %686 }
0x1fe9   :  { %v689_v37 = vmul.f32 %v687_v33, %v2105_v45 }
0x1feb   :  { %772 = vrot.lane.b32.xlu0 %v770_v62, %s1835_s12 }
0x1fec   :  { %v859_v13 = vpop.permute.xlu1 %858 }
0x1fed   :  { %v861_v35 = vmul.f32 %v859_v13, %v2153_v46 }
0x1fef   :  { %944 = vrot.lane.b32.xlu0 %v942_v18, %s1835_s12 }
0x1ff0   :  { %v1031_v44 = vpop.permute.xlu1 %1030 }
0x1ff3   :  { %1116 = vrot.lane.b32.xlu0 %v1114_v14, %s1835_s12 }
0x1ff4   :  { %v1203_v45 = vpop.permute.xlu1 %1202 }
0x1ff5   :  { %v1205_v51 = vmul.f32 %v1203_v45, %v2237_v16 }
0x2051   :  { %v1276_v1 = vpop.permute.xlu0 %1275 }
0x2052   :  { %v1278_v2 = vadd.f32 %v1276_v1, %v1268_v63 }
0x2054   :  { %1773 = vtanh.f32 %v1278_v2 }
0x2055   :  { %v429_v24 = vpop.permute.xlu0 %428 }
0x2056   :  { %v431_v25 = vmul.f32 %v429_v24, %v2017_v6 }
0x2058   :  { %v432_v28 = vadd.f32 %v431_v25, %v344_v26  ;;  %v1417_v26 = vld [vmem:[%s2298_s5] ss:$0 sm:$0xff] }
0x2059   :  { %v601_v29 = vpop.permute.xlu0 %600 }
0x205a   :  { %v518_v31 = vadd.f32 %v517_v30, %v432_v28  ;;  %v603_v32 = vmul.f32 %v601_v29, %v2081_v20  ;;  %v1033_v20 = vmul.f32 %v1031_v44, %v2200_v47 }
0x205c   :  { %v604_v34 = vadd.f32 %v603_v32, %v518_v31 }
0x205d   :  { %v773_v36 = vpop.permute.xlu0 %772 }
0x205e   :  { %v1774_v4 = vpop.eup %1773  ;;  %v690_v15 = vadd.f32 %v689_v37, %v604_v34  ;;  %v775_v38 = vmul.f32 %v773_v36, %v2129_v21  ;;  %v1289_v21 = vpop.permute.xlu1 %1288 }
0x205f   :  { %1281 = vrot.lane.b32.xlu0 %v1774_v4, %s1833_s11 }
0x2060   :  { %v776_v6 = vadd.f32 %v775_v38, %v690_v15 }
0x2061   :  { %v945_v9 = vpop.permute.xlu0 %944 }
0x2062   :  { %v862_v8 = vadd.f32 %v861_v35, %v776_v6  ;;  %v947_v40 = vmul.f32 %v945_v9, %v2177_v22 }
0x2064   :  { %v948_v41 = vadd.f32 %v947_v40, %v862_v8 }
0x2065   :  { %v1117_v42 = vpop.permute.xlu0 %1116 }
0x2066   :  { %v1034_v43 = vadd.f32 %v1033_v20, %v948_v41  ;;  %v1119_v48 = vmul.f32 %v1117_v42, %v2223_v11 }
0x2068   :  { %v1120_v49 = vadd.f32 %v1119_v48, %v1034_v43 }
0x206a   :  { %v1206_v53 = vadd.f32 %v1205_v51, %v1120_v49 }
0x20d1   :  { %v1282_v50 = vpop.permute.xlu0 %1281 }
0x20d2   :  { %v1284_v52 = vmul.f32 %v1772_v7, %v1282_v50 }
0x20d4   :  { %v1291_v46 = vmul.f32 %v1289_v21, %v1284_v52 }
0x20d6   :  { %v1292_v54 = vadd.f32 %v1291_v46, %v1206_v53 }
0x20d8   :  { %v1294_v3 = vrot.slane %v1292_v54, 2 }
0x20da   :  { %v1296_v22 = vsub.f32 %v1292_v54, %v1294_v3 }
0x20dc   :  { %v1297_v55 = vand.u32 2147483647, %v1296_v22 }
0x20de   :  { %1299 = vrot.lane.b32.xlu0 %v1297_v55, %s1835_s12 }
0x2150   :  { %v1300_v47 = vpop.permute.xlu0 %1299 }
0x2151   :  { %v1307_v56 = vsel %vm1306_vm8, %v1300_v47, 0.0  ;;  %v1303_v11 = vsel %vm1302_vm9, %v1300_v47, 0.0 }
0x2152   :  { %1308 = vadd.xlane.f32.xlu1 %v1307_v56  ;;  %1304 = vadd.xlane.f32.xlu0 %v1303_v11 }
0x21df   :  { %v1309_v39 = vpop.xlane.xlu1 %1308  ;;  %v1305_v12 = vpop.xlane.xlu0 %1304 }
0x21e0   :  { %v1311_v57 = vrot.slane %v1309_v39, 4 }
0x21e2   :  { %v1313_v16 = vadd.f32 %v1311_v57, %v1305_v12 }
0x21e4   :  { %v1314_v17 = vsub.f32 0.0, %v1313_v16 }
0x21e6   :  { %v1316_v58 = vsel %vm1315_vm10, %v1314_v17, -inf }
0x21e7   :  { %v1317_v5 = vrot.slane %v1316_v58, 4 }
0x21e9   :  { %v1318_v59 = vmax.f32 %v1316_v58, %v1317_v5 }
0x21eb   :  { %v1319_v7 = vrot.slane %v1318_v59, 2 }
0x21ed   :  { %v1320_v0 = vmax.f32 %v1318_v59, %v1319_v7 }
0x21ef   :  { %v1321_v60 = vrot.slane %v1320_v0, 1 }
0x21f1   :  { %v1322_v10 = vmax.f32 %v1320_v0, %v1321_v60 }
0x21f3   :  { %v1323_v19 = vsub.f32 %v1314_v17, %v1322_v10 }
0x21f5   :  { %v1324_v61 = vmul.f32 1.442695, %v1323_v19 }
0x21f7   :  { %1775 = vpow2.f32 %v1324_v61 }
0x2201   :  { %v1776_v62 = vpop.eup %1775 }
0x2202   :  { %v1326_v18 = vsel %vm1315_vm10, %v1776_v62, 0.0 }
0x2203   :  { %v1327_v14 = vrot.slane %v1326_v18, 4 }
0x2205   :  { %v1328_v63 = vadd.f32 %v1327_v14, %v1326_v18 }
0x2207   :  { %v1329_v1 = vrot.slane %v1328_v63, 2 }
0x2209   :  { %v1330_v2 = vadd.f32 %v1329_v1, %v1328_v63 }
0x220b   :  { %v1331_v4 = vrot.slane %v1330_v2, 1 }
0x220d   :  { %v1332_v23 = vadd.f32 %v1331_v4, %v1330_v2 }
0x220f   :  { %1777 = vrcp.f32 %v1332_v23 }
0x2219   :  { %v1778_v24 = vpop.eup %1777 }
0x221a   :  { %v1334_v25 = vmul.f32 %v1778_v24, %v1776_v62 }
0x221c   :  { %1338 = vperm.xlu0 %1664, %v1334_v25  }
0x229b   :  { %v1339_v28 = vpop.permute.xlu0 %1338 }
0x229c   :  { %v1347_v29 = vmul.f32 %v1417_v26, %v1339_v28 }
0x229e   :  { %v1355_v30 = vadd.f32 %v1418_v27, %v1347_v29 }
0x22a0   :  { %1357 = vst.msk [vmem:[#allocation5] sm:$0x3] %vm1356_vm11, %v1355_v30 }
0x22a1   :  { %1812 = shalt.err (!%p1809_p12)
}
0x22a2   :  { %s1813_s27 = scalar_lea.hbm %s2300_s7, 32 }
0x22a3   :  { %p1814_p13 = scmp.ne.s32.totalorder %s2300_s7, %s1813_s27  ;;  %p1817_p0 = scmp.lt.u32.totalorder %s1813_s27, %s2300_s7 }
0x22a5   :  { %p1819_p1 = pnand %p1817_p0, %p1814_p13 }
0x22a7   :  { %1822 = shalt.err (!%p1819_p1)
}
0x22a8   :  { %1367 = dma.vmem_to_hbm [thread:$0]  %s1365_s24, 32, %s2300_s7, [#allocation4]  }
0x22a9   :  { %1825 = dma.done.wait [#allocation4], 32  }
0x22aa   :  { %1826 = vsyncadd [#allocation4], 4294967264 }
0x22ab   :  { %1371 = vsyncpa [#allocation3], 1 }
0x22ac   :  { %1372 = vsyncpa [#allocation4], 1 }

</bundles_post_ra>
